<compile_context>
chip_gen: v7x
topology: tpu7x:2x2x1
jax: 0.10.0
libtpu: 0.0.40
codegen_flags: <defaults>
</compile_context>

<pallas_src>
import functools
import math

import jax
import jax.numpy as jnp
from jax.experimental import pallas as pl
from jax.experimental.pallas import tpu as pltpu

K = 5     # conv kernel size
PAD = 2   # = floor(5 / 2)


def _round_up(x, m):
    return ((x + m - 1) // m) * m


def _encoder_prenet_kernel(tok_ref, table_ref,
                           w1_ref, sh1_ref,
                           w2_ref, sh2_ref,
                           w3_ref, sh3_ref,
                           wp_ref, bp_ref,
                           out_ref,
                           xpad_ref, col_ref,
                           *, valid_len):
    """One Bb-element batch block per grid step:
       embed -> 3 x (conv1d(K=5, pad=2) + folded BN + ReLU) -> projection."""
    bb, l_pad, h_pad = out_ref.shape
    v_pad, e_pad = table_ref.shape
    l_ext, c_max = xpad_ref.shape[1], xpad_ref.shape[2]

    # Zero only the wrap rows [l_pad, l_ext): data rows are fully overwritten
    # every layer.  The scratch persists across grid steps and each TensorCore
    # owns a private copy under the "parallel" batch axis, so this is done every
    # step rather than gated on program_id == 0.
    for be in range(bb):
        xpad_ref[be, l_pad:, :] = jnp.zeros((l_ext - l_pad, c_max), jnp.float32)

    def store_rows(be, rows, width):
        # Write one element's data rows, then re-zero rows >= valid_len so the
        # next conv sees the same zero padding PyTorch does (small static tail
        # store instead of a full-width row-mask multiply).
        xpad_ref[be, :l_pad, :width] = rows
        if valid_len != l_pad:
            xpad_ref[be, valid_len:l_pad, :] = jnp.zeros(
                (l_pad - valid_len, c_max), jnp.float32)

    # ---- embedding: fused gather as one-hot @ table on the MXU --------------
    iota_v = jax.lax.broadcasted_iota(jnp.int32, (l_pad, v_pad), 1)
    for be in range(bb):
        onehot = jnp.where(tok_ref[be] == iota_v, 1.0, 0.0).astype(jnp.bfloat16)
        emb = jnp.dot(onehot, table_ref[...],
                      preferred_element_type=jnp.float32)        # (l_pad, e_pad)
        store_rows(be, emb, e_pad)

    # ---- conv1d + folded BN + ReLU as one deep-K matmul per layer -----------
    def conv_bn_relu(cin, w_ref, sh_ref):
        # Build the bf16 im2col directly in scratch: per element, K rolled (XLU)
        # copies of the zero-wrapped buffer give sublane-aligned taps, stored at
        # 16-row / 128-lane aligned offsets.
        for be in range(bb):
            buf = xpad_ref[be, :, :cin]                          # (l_ext, cin) f32
            for k in range(K):
                shift = (PAD - k) % l_ext
                rolled = buf if shift == 0 else pltpu.roll(buf, shift=shift, axis=0)
                col_ref[be * l_pad:(be + 1) * l_pad,
                        k * cin:(k + 1) * cin] = rolled[:l_pad, :].astype(jnp.bfloat16)
        acc = jnp.dot(col_ref[:, :K * cin], w_ref[...],
                      preferred_element_type=jnp.float32)        # (bb*l_pad, h_pad)
        # BN scale is folded into w in the wrapper; only add the folded shift.
        return jnp.maximum(acc + sh_ref[...], 0.0)

    h = conv_bn_relu(e_pad, w1_ref, sh1_ref)
    for be in range(bb):
        store_rows(be, h[be * l_pad:(be + 1) * l_pad, :], h_pad)
    h = conv_bn_relu(h_pad, w2_ref, sh2_ref)
    for be in range(bb):
        store_rows(be, h[be * l_pad:(be + 1) * l_pad, :], h_pad)
    h = conv_bn_relu(h_pad, w3_ref, sh3_ref)

    # ---- final Linear projection (Dropout layers are identity in eval) ------
    out = jnp.dot(h.astype(jnp.bfloat16), wp_ref[...],
                  preferred_element_type=jnp.float32) + bp_ref[...]
    for be in range(bb):
        # rows >= valid_len are garbage; the wrapper slices them off.
        out_ref[be] = out[be * l_pad:(be + 1) * l_pad, :].astype(out_ref.dtype)


def encoder_prenet_forward(tokens, params):
    """tokens: (B, L) int32.  Returns (B, L, num_hidden) float32."""
    B, L = tokens.shape
    V, E = params["embed"].shape
    H = params["wp"].shape[1]

    # Lane-dense channel axes; time rounded to 16 so bf16 im2col row blocks are
    # packed-sublane aligned when Bb elements are stacked.
    L_pad = _round_up(L, 16)
    E_pad = _round_up(E, 128)
    H_pad = _round_up(H, 128)
    V_pad = _round_up(V, 128)
    C_max = max(E_pad, H_pad)
    L_ext = L_pad + 8                      # zero wrap region for the roll im2col

    # Batch blocking: give the MXU a real M dimension (target >= 256 rows).
    Bb = max(1, min(B, -(-256 // L_pad)))
    Bb = min(Bb, 16)
    B_pad = _round_up(B, Bb)

    eps = 1e-5

    def fold_conv(w, conv_b, gamma, beta, mean, var, cin, cin_pad):
        # Fold conv bias + BatchNorm(eval) into (scaled bf16 weights, f32 shift).
        # NOTE: w is (K, Cin, Cout); a real PyTorch Conv1d checkpoint stores
        # (Cout, Cin, K) and must be transposed to this layout before folding.
        scale = gamma / jnp.sqrt(var + eps)                    # (H,)
        shift = beta - mean * scale + conv_b * scale           # (H,)
        w = w * scale[None, None, :]
        w = jnp.pad(w, ((0, 0), (0, cin_pad - cin), (0, H_pad - H)))
        w = w.reshape(K * cin_pad, H_pad).astype(jnp.bfloat16)
        shift = jnp.pad(shift, (0, H_pad - H)).reshape(1, H_pad).astype(jnp.float32)
        return w, shift

    w1f, sh1 = fold_conv(params["w1"], params["b1"], params["g1"], params["be1"],
                         params["m1"], params["v1"], E, E_pad)
    w2f, sh2 = fold_conv(params["w2"], params["b2"], params["g2"], params["be2"],
                         params["m2"], params["v2"], H, H_pad)
    w3f, sh3 = fold_conv(params["w3"], params["b3"], params["g3"], params["be3"],
                         params["m3"], params["v3"], H, H_pad)
    # projection applied as x @ wp; a PyTorch Linear checkpoint needs weight.T
    wpf = jnp.pad(params["wp"], ((0, H_pad - H), (0, H_pad - H))).astype(jnp.bfloat16)
    bpf = jnp.pad(params["bp"], (0, H_pad - H)).reshape(1, H_pad).astype(jnp.float32)

    # Embedding table stays resident in VMEM (bf16); row 0 is the padding_idx=0
    # zero row, which also covers the zero-padded tail tokens.
    # TODO(synk): for very large vocabularies fall back to a wrapper-side gather.
    table = jnp.pad(params["embed"],
                    ((0, V_pad - V), (0, E_pad - E))).astype(jnp.bfloat16)

    tok = jnp.pad(tokens.astype(jnp.int32),
                  ((0, B_pad - B), (0, L_pad - L)))            # pad with id 0
    tok = tok.reshape(B_pad, L_pad, 1)

    kernel = functools.partial(_encoder_prenet_kernel, valid_len=L)

    # Constant-index specs: weights/table resident in VMEM, single-buffered
    # (Buffered(1)) since the block index never changes.
    def const_spec(shape):
        return pl.BlockSpec(shape, lambda b: (0,) * len(shape),
                            pipeline_mode=pl.Buffered(1))

    # VMEM budget: single-buffered weights + double-buffered IO + scratch +
    # in-kernel temporaries, capped at ~85% of the chip's physical VMEM.
    w_bytes = (V_pad * E_pad + K * E_pad * H_pad + 2 * K * H_pad * H_pad
               + H_pad * H_pad) * 2 + 4 * H_pad * 4
    io_bytes = 2 * (Bb * L_pad * 128 * 4) + 2 * (Bb * L_pad * H_pad * 4)
    scratch_bytes = Bb * L_ext * C_max * 4 + Bb * L_pad * K * C_max * 2
    tmp_bytes = (K * L_ext * C_max * 4          # rolled tap copies
                 + 3 * Bb * L_pad * H_pad * 4   # acc / h / out temporaries
                 + L_pad * V_pad * 4)           # one-hot
    est = w_bytes + io_bytes + scratch_bytes + tmp_bytes + (4 << 20)
    try:
        cap = int(pltpu.get_tpu_info().vmem_capacity_bytes * 0.85)
    except Exception:
        cap = 48 << 20                          # conservative: fits v5e/v6e/v7x
    vmem_limit = int(min(max(est, 32 << 20), cap))

    out = pl.pallas_call(
        kernel,
        out_shape=jax.ShapeDtypeStruct((B_pad, L_pad, H_pad), jnp.float32),
        grid=(B_pad // Bb,),
        in_specs=[
            pl.BlockSpec((Bb, L_pad, 1), lambda b: (b, 0, 0)),        # token ids
            const_spec((V_pad, E_pad)),                                # embedding
            const_spec((K * E_pad, H_pad)), const_spec((1, H_pad)),    # conv1+bn1
            const_spec((K * H_pad, H_pad)), const_spec((1, H_pad)),    # conv2+bn2
            const_spec((K * H_pad, H_pad)), const_spec((1, H_pad)),    # conv3+bn3
            const_spec((H_pad, H_pad)), const_spec((1, H_pad)),        # projection
        ],
        out_specs=pl.BlockSpec((Bb, L_pad, H_pad), lambda b: (b, 0, 0)),
        scratch_shapes=[
            # TODO(synk): move this buffer to bf16 once packed-sublane
            # pltpu.roll is verified on all target chips; the K-times-larger
            # im2col scratch below is already bf16.
            pltpu.VMEM((Bb, L_ext, C_max), jnp.float32),        # zero-wrapped time buf
            pltpu.VMEM((Bb * L_pad, K * C_max), jnp.bfloat16),  # bf16 im2col
        ],
        compiler_params=pltpu.CompilerParams(
            dimension_semantics=("parallel",),
            vmem_limit_bytes=vmem_limit),
    )(tok, table, w1f, sh1, w2f, sh2, w3f, sh3, wpf, bpf)

    return out[:B, :L, :H]


def _xavier_uniform(key, shape, fan_in, fan_out, gain):
    bound = gain * math.sqrt(6.0 / (fan_in + fan_out))
    return jax.random.uniform(key, shape, jnp.float32, -bound, bound)


def init_params(key, vocab_size, embedding_size, num_hidden):
    E, H = embedding_size, num_hidden
    keys = jax.random.split(key, 16)
    relu_gain = math.sqrt(2.0)

    embed = jax.random.normal(keys[0], (vocab_size, E), jnp.float32)
    embed = embed.at[0].set(0.0)                              # padding_idx=0

    # conv weights stored as (K, Cin, Cout)
    w1 = _xavier_uniform(keys[1], (K, E, H), E * K, H * K, relu_gain)
    w2 = _xavier_uniform(keys[2], (K, H, H), H * K, H * K, relu_gain)
    w3 = _xavier_uniform(keys[3], (K, H, H), H * K, H * K, relu_gain)
    b1 = jax.random.normal(keys[4], (H,), jnp.float32) * 0.01
    b2 = jax.random.normal(keys[5], (H,), jnp.float32) * 0.01
    b3 = jax.random.normal(keys[6], (H,), jnp.float32) * 0.01

    # BatchNorm params (eval-mode running stats: mean=0, var=1)
    ones, zeros = jnp.ones((H,), jnp.float32), jnp.zeros((H,), jnp.float32)
    g1 = g2 = g3 = ones
    be1 = be2 = be3 = zeros
    m1 = m2 = m3 = zeros
    v1 = v2 = v3 = ones

    # projection Linear: weight applied as x @ wp, xavier with linear gain
    wp = _xavier_uniform(keys[7], (H, H), H, H, 1.0)
    bp = jax.random.normal(keys[8], (H,), jnp.float32) * 0.01

    return dict(embed=embed,
                w1=w1, b1=b1, g1=g1, be1=be1, m1=m1, v1=v1,
                w2=w2, b2=b2, g2=g2, be2=be2, m2=m2, v2=v2,
                w3=w3, b3=b3, g3=g3, be3=be3, m3=m3, v3=v3,
                wp=wp, bp=bp)


if __name__ == "__main__":
    B, L = 2, 8
    VOCAB = 16
    EMBEDDING_SIZE = 32
    NUM_HIDDEN = 32

    key = jax.random.PRNGKey(0)
    pkey, tkey = jax.random.split(key)
    params = init_params(pkey, VOCAB, EMBEDDING_SIZE, NUM_HIDDEN)
    tokens = jax.random.randint(tkey, (B, L), 0, VOCAB, dtype=jnp.int32)

    out = encoder_prenet_forward(tokens, params)
    jax.block_until_ready(out)
    assert out.shape == (B, L, NUM_HIDDEN), out.shape
    print("KERNEL_OK")
</pallas_src>

<mosaic_0001>
module attributes {stable_mosaic.version = 11 : i64} {
  func.func @_encoder_prenet_kernel(%arg0: i32, %arg1: memref<2x16x1xi32, #tpu.memory_space<vmem>>, %arg2: memref<128x128xbf16, #tpu.memory_space<vmem>>, %arg3: memref<640x128xbf16, #tpu.memory_space<vmem>>, %arg4: memref<1x128xf32, #tpu.memory_space<vmem>>, %arg5: memref<640x128xbf16, #tpu.memory_space<vmem>>, %arg6: memref<1x128xf32, #tpu.memory_space<vmem>>, %arg7: memref<640x128xbf16, #tpu.memory_space<vmem>>, %arg8: memref<1x128xf32, #tpu.memory_space<vmem>>, %arg9: memref<128x128xbf16, #tpu.memory_space<vmem>>, %arg10: memref<1x128xf32, #tpu.memory_space<vmem>>, %arg11: memref<2x16x128xf32, #tpu.memory_space<vmem>>, %arg12: memref<2x24x128xf32, #tpu.memory_space<vmem>>, %arg13: memref<32x640xbf16, #tpu.memory_space<vmem>>) attributes {dimension_semantics = [#tpu.dimension_semantics<parallel>], iteration_bounds = array<i64: 1>, scalar_prefetch = 0 : i64, scratch_operands = 2 : i64, tpu.core_type = #tpu.core_type<tc>, window_params = [{transform_indices = @transform_0, window_bounds = array<i64: 2, 16, 1>}, {pipeline_mode = #tpu.pipeline_mode<synchronous>, transform_indices = @transform_1, window_bounds = array<i64: 128, 128>}, {pipeline_mode = #tpu.pipeline_mode<synchronous>, transform_indices = @transform_2, window_bounds = array<i64: 640, 128>}, {pipeline_mode = #tpu.pipeline_mode<synchronous>, transform_indices = @transform_3, window_bounds = array<i64: 1, 128>}, {pipeline_mode = #tpu.pipeline_mode<synchronous>, transform_indices = @transform_4, window_bounds = array<i64: 640, 128>}, {pipeline_mode = #tpu.pipeline_mode<synchronous>, transform_indices = @transform_5, window_bounds = array<i64: 1, 128>}, {pipeline_mode = #tpu.pipeline_mode<synchronous>, transform_indices = @transform_6, window_bounds = array<i64: 640, 128>}, {pipeline_mode = #tpu.pipeline_mode<synchronous>, transform_indices = @transform_7, window_bounds = array<i64: 1, 128>}, {pipeline_mode = #tpu.pipeline_mode<synchronous>, transform_indices = @transform_8, window_bounds = array<i64: 128, 128>}, {pipeline_mode = #tpu.pipeline_mode<synchronous>, transform_indices = @transform_9, window_bounds = array<i64: 1, 128>}, {transform_indices = @transform_10, window_bounds = array<i64: 2, 16, 128>}]} {
    %cst = arith.constant 0.000000e+00 : f32
    %0 = vector.broadcast %cst : f32 to vector<8x128xf32>
    %c0 = arith.constant 0 : index
    %c16 = arith.constant 16 : index
    %c0_0 = arith.constant 0 : index
    %1 = vector.load %arg12[%c0, %c16, %c0_0] : memref<2x24x128xf32, #tpu.memory_space<vmem>>, vector<1x8x128xf32>
    %2 = vector.shape_cast %1 : vector<1x8x128xf32> to vector<8x128xf32>
    %3 = vector.shape_cast %0 : vector<8x128xf32> to vector<1x8x128xf32>
    tpu.vector_store %arg12[%c0, %c16, %c0_0], %3 {strides = array<i32>} : memref<2x24x128xf32, #tpu.memory_space<vmem>>, vector<1x8x128xf32>,
    %cst_1 = arith.constant 0.000000e+00 : f32
    %4 = vector.broadcast %cst_1 : f32 to vector<8x128xf32>
    %c1 = arith.constant 1 : index
    %c16_2 = arith.constant 16 : index
    %c0_3 = arith.constant 0 : index
    %5 = vector.load %arg12[%c1, %c16_2, %c0_3] : memref<2x24x128xf32, #tpu.memory_space<vmem>>, vector<1x8x128xf32>
    %6 = vector.shape_cast %5 : vector<1x8x128xf32> to vector<8x128xf32>
    %7 = vector.shape_cast %4 : vector<8x128xf32> to vector<1x8x128xf32>
    tpu.vector_store %arg12[%c1, %c16_2, %c0_3], %7 {strides = array<i32>} : memref<2x24x128xf32, #tpu.memory_space<vmem>>, vector<1x8x128xf32>,
    %8 = tpu.iota {dimensions = array<i32: 1>} : vector<16x128xi32>
    %c0_4 = arith.constant 0 : index
    %c0_5 = arith.constant 0 : index
    %c0_6 = arith.constant 0 : index
    %9 = vector.load %arg1[%c0_4, %c0_5, %c0_6] : memref<2x16x1xi32, #tpu.memory_space<vmem>>, vector<1x16x1xi32>
    %10 = vector.shape_cast %9 : vector<1x16x1xi32> to vector<16x1xi32>
    %11 = vector.broadcast %10 : vector<16x1xi32> to vector<16x128xi32>
    %12 = arith.cmpi eq, %11, %8 : vector<16x128xi32>
    %cst_7 = arith.constant 1.000000e+00 : f32
    %cst_8 = arith.constant 0.000000e+00 : f32
    %13 = vector.broadcast %cst_7 : f32 to vector<16x128xf32>
    %14 = vector.broadcast %cst_8 : f32 to vector<16x128xf32>
    %15 = arith.select %12, %13, %14 : vector<16x128xi1>, vector<16x128xf32>
    %16 = arith.truncf %15 : vector<16x128xf32> to vector<16x128xbf16>
    %c0_9 = arith.constant 0 : index
    %c0_10 = arith.constant 0 : index
    %17 = vector.load %arg2[%c0_9, %c0_10] : memref<128x128xbf16, #tpu.memory_space<vmem>>, vector<128x128xbf16>
    %cst_11 = arith.constant dense<0.000000e+00> : vector<16x128xf32>
    %18 = tpu.matmul %16, %17, %cst_11 {dimension_numbers = #tpu.dot_dimension_numbers<[1], [0], [0], [1], [0, 0, 1, 1], [], []>} : vector<16x128xbf16>, vector<128x128xbf16>, vector<16x128xf32> -> vector<16x128xf32>
    %c0_12 = arith.constant 0 : index
    %c0_13 = arith.constant 0 : index
    %c0_14 = arith.constant 0 : index
    %19 = vector.load %arg12[%c0_12, %c0_13, %c0_14] : memref<2x24x128xf32, #tpu.memory_space<vmem>>, vector<1x16x128xf32>
    %20 = vector.shape_cast %19 : vector<1x16x128xf32> to vector<16x128xf32>
    %21 = vector.shape_cast %18 : vector<16x128xf32> to vector<1x16x128xf32>
    tpu.vector_store %arg12[%c0_12, %c0_13, %c0_14], %21 {strides = array<i32>} : memref<2x24x128xf32, #tpu.memory_space<vmem>>, vector<1x16x128xf32>,
    %cst_15 = arith.constant 0.000000e+00 : f32
    %22 = vector.broadcast %cst_15 : f32 to vector<8x128xf32>
    %c0_16 = arith.constant 0 : index
    %c8 = arith.constant 8 : index
    %c0_17 = arith.constant 0 : index
    %23 = vector.load %arg12[%c0_16, %c8, %c0_17] : memref<2x24x128xf32, #tpu.memory_space<vmem>>, vector<1x8x128xf32>
    %24 = vector.shape_cast %23 : vector<1x8x128xf32> to vector<8x128xf32>
    %25 = vector.shape_cast %22 : vector<8x128xf32> to vector<1x8x128xf32>
    tpu.vector_store %arg12[%c0_16, %c8, %c0_17], %25 {strides = array<i32>} : memref<2x24x128xf32, #tpu.memory_space<vmem>>, vector<1x8x128xf32>,
    %c1_18 = arith.constant 1 : index
    %c0_19 = arith.constant 0 : index
    %c0_20 = arith.constant 0 : index
    %26 = vector.load %arg1[%c1_18, %c0_19, %c0_20] : memref<2x16x1xi32, #tpu.memory_space<vmem>>, vector<1x16x1xi32>
    %27 = vector.shape_cast %26 : vector<1x16x1xi32> to vector<16x1xi32>
    %28 = vector.broadcast %27 : vector<16x1xi32> to vector<16x128xi32>
    %29 = arith.cmpi eq, %28, %8 : vector<16x128xi32>
    %cst_21 = arith.constant 1.000000e+00 : f32
    %cst_22 = arith.constant 0.000000e+00 : f32
    %30 = vector.broadcast %cst_21 : f32 to vector<16x128xf32>
    %31 = vector.broadcast %cst_22 : f32 to vector<16x128xf32>
    %32 = arith.select %29, %30, %31 : vector<16x128xi1>, vector<16x128xf32>
    %33 = arith.truncf %32 : vector<16x128xf32> to vector<16x128xbf16>
    %c0_23 = arith.constant 0 : index
    %c0_24 = arith.constant 0 : index
    %34 = vector.load %arg2[%c0_23, %c0_24] : memref<128x128xbf16, #tpu.memory_space<vmem>>, vector<128x128xbf16>
    %cst_25 = arith.constant dense<0.000000e+00> : vector<16x128xf32>
    %35 = tpu.matmul %33, %34, %cst_25 {dimension_numbers = #tpu.dot_dimension_numbers<[1], [0], [0], [1], [0, 0, 1, 1], [], []>} : vector<16x128xbf16>, vector<128x128xbf16>, vector<16x128xf32> -> vector<16x128xf32>
    %c1_26 = arith.constant 1 : index
    %c0_27 = arith.constant 0 : index
    %c0_28 = arith.constant 0 : index
    %36 = vector.load %arg12[%c1_26, %c0_27, %c0_28] : memref<2x24x128xf32, #tpu.memory_space<vmem>>, vector<1x16x128xf32>
    %37 = vector.shape_cast %36 : vector<1x16x128xf32> to vector<16x128xf32>
    %38 = vector.shape_cast %35 : vector<16x128xf32> to vector<1x16x128xf32>
    tpu.vector_store %arg12[%c1_26, %c0_27, %c0_28], %38 {strides = array<i32>} : memref<2x24x128xf32, #tpu.memory_space<vmem>>, vector<1x16x128xf32>,
    %cst_29 = arith.constant 0.000000e+00 : f32
    %39 = vector.broadcast %cst_29 : f32 to vector<8x128xf32>
    %c1_30 = arith.constant 1 : index
    %c8_31 = arith.constant 8 : index
    %c0_32 = arith.constant 0 : index
    %40 = vector.load %arg12[%c1_30, %c8_31, %c0_32] : memref<2x24x128xf32, #tpu.memory_space<vmem>>, vector<1x8x128xf32>
    %41 = vector.shape_cast %40 : vector<1x8x128xf32> to vector<8x128xf32>
    %42 = vector.shape_cast %39 : vector<8x128xf32> to vector<1x8x128xf32>
    tpu.vector_store %arg12[%c1_30, %c8_31, %c0_32], %42 {strides = array<i32>} : memref<2x24x128xf32, #tpu.memory_space<vmem>>, vector<1x8x128xf32>,
    %c0_33 = arith.constant 0 : index
    %c0_34 = arith.constant 0 : index
    %c0_35 = arith.constant 0 : index
    %43 = vector.load %arg12[%c0_33, %c0_34, %c0_35] : memref<2x24x128xf32, #tpu.memory_space<vmem>>, vector<1x24x128xf32>
    %44 = vector.shape_cast %43 : vector<1x24x128xf32> to vector<24x128xf32>
    %c2_i32 = arith.constant 2 : i32
    %45 = tpu.dynamic_rotate %44 by %c2_i32 dim 0 : vector<24x128xf32>, i32 -> vector<24x128xf32>
    %46 = vector.extract_strided_slice %45 {offsets = [0, 0], sizes = [16, 128], strides = [1, 1]} : vector<24x128xf32> to vector<16x128xf32>
    %47 = arith.truncf %46 : vector<16x128xf32> to vector<16x128xbf16>
    %c0_36 = arith.constant 0 : index
    %c0_37 = arith.constant 0 : index
    %48 = vector.load %arg13[%c0_36, %c0_37] : memref<32x640xbf16, #tpu.memory_space<vmem>>, vector<16x128xbf16>
    tpu.vector_store %arg13[%c0_36, %c0_37], %47 {strides = array<i32>} : memref<32x640xbf16, #tpu.memory_space<vmem>>, vector<16x128xbf16>,
    %c1_i32 = arith.constant 1 : i32
    %49 = tpu.dynamic_rotate %44 by %c1_i32 dim 0 : vector<24x128xf32>, i32 -> vector<24x128xf32>
    %50 = vector.extract_strided_slice %49 {offsets = [0, 0], sizes = [16, 128], strides = [1, 1]} : vector<24x128xf32> to vector<16x128xf32>
    %51 = arith.truncf %50 : vector<16x128xf32> to vector<16x128xbf16>
    %c0_38 = arith.constant 0 : index
    %c128 = arith.constant 128 : index
    %52 = vector.load %arg13[%c0_38, %c128] : memref<32x640xbf16, #tpu.memory_space<vmem>>, vector<16x128xbf16>
    tpu.vector_store %arg13[%c0_38, %c128], %51 {strides = array<i32>} : memref<32x640xbf16, #tpu.memory_space<vmem>>, vector<16x128xbf16>,
    %53 = vector.extract_strided_slice %44 {offsets = [0, 0], sizes = [16, 128], strides = [1, 1]} : vector<24x128xf32> to vector<16x128xf32>
    %54 = arith.truncf %53 : vector<16x128xf32> to vector<16x128xbf16>
    %c0_39 = arith.constant 0 : index
    %c256 = arith.constant 256 : index
    %55 = vector.load %arg13[%c0_39, %c256] : memref<32x640xbf16, #tpu.memory_space<vmem>>, vector<16x128xbf16>
    tpu.vector_store %arg13[%c0_39, %c256], %54 {strides = array<i32>} : memref<32x640xbf16, #tpu.memory_space<vmem>>, vector<16x128xbf16>,
    %c23_i32 = arith.constant 23 : i32
    %56 = tpu.dynamic_rotate %44 by %c23_i32 dim 0 : vector<24x128xf32>, i32 -> vector<24x128xf32>
    %57 = vector.extract_strided_slice %56 {offsets = [0, 0], sizes = [16, 128], strides = [1, 1]} : vector<24x128xf32> to vector<16x128xf32>
    %58 = arith.truncf %57 : vector<16x128xf32> to vector<16x128xbf16>
    %c0_40 = arith.constant 0 : index
    %c384 = arith.constant 384 : index
    %59 = vector.load %arg13[%c0_40, %c384] : memref<32x640xbf16, #tpu.memory_space<vmem>>, vector<16x128xbf16>
    tpu.vector_store %arg13[%c0_40, %c384], %58 {strides = array<i32>} : memref<32x640xbf16, #tpu.memory_space<vmem>>, vector<16x128xbf16>,
    %c22_i32 = arith.constant 22 : i32
    %60 = tpu.dynamic_rotate %44 by %c22_i32 dim 0 : vector<24x128xf32>, i32 -> vector<24x128xf32>
    %61 = vector.extract_strided_slice %60 {offsets = [0, 0], sizes = [16, 128], strides = [1, 1]} : vector<24x128xf32> to vector<16x128xf32>
    %62 = arith.truncf %61 : vector<16x128xf32> to vector<16x128xbf16>
    %c0_41 = arith.constant 0 : index
    %c512 = arith.constant 512 : index
    %63 = vector.load %arg13[%c0_41, %c512] : memref<32x640xbf16, #tpu.memory_space<vmem>>, vector<16x128xbf16>
    tpu.vector_store %arg13[%c0_41, %c512], %62 {strides = array<i32>} : memref<32x640xbf16, #tpu.memory_space<vmem>>, vector<16x128xbf16>,
    %c1_42 = arith.constant 1 : index
    %c0_43 = arith.constant 0 : index
    %c0_44 = arith.constant 0 : index
    %64 = vector.load %arg12[%c1_42, %c0_43, %c0_44] : memref<2x24x128xf32, #tpu.memory_space<vmem>>, vector<1x24x128xf32>
    %65 = vector.shape_cast %64 : vector<1x24x128xf32> to vector<24x128xf32>
    %c2_i32_45 = arith.constant 2 : i32
    %66 = tpu.dynamic_rotate %65 by %c2_i32_45 dim 0 : vector<24x128xf32>, i32 -> vector<24x128xf32>
    %67 = vector.extract_strided_slice %66 {offsets = [0, 0], sizes = [16, 128], strides = [1, 1]} : vector<24x128xf32> to vector<16x128xf32>
    %68 = arith.truncf %67 : vector<16x128xf32> to vector<16x128xbf16>
    %c16_46 = arith.constant 16 : index
    %c0_47 = arith.constant 0 : index
    %69 = vector.load %arg13[%c16_46, %c0_47] : memref<32x640xbf16, #tpu.memory_space<vmem>>, vector<16x128xbf16>
    tpu.vector_store %arg13[%c16_46, %c0_47], %68 {strides = array<i32>} : memref<32x640xbf16, #tpu.memory_space<vmem>>, vector<16x128xbf16>,
    %c1_i32_48 = arith.constant 1 : i32
    %70 = tpu.dynamic_rotate %65 by %c1_i32_48 dim 0 : vector<24x128xf32>, i32 -> vector<24x128xf32>
    %71 = vector.extract_strided_slice %70 {offsets = [0, 0], sizes = [16, 128], strides = [1, 1]} : vector<24x128xf32> to vector<16x128xf32>
    %72 = arith.truncf %71 : vector<16x128xf32> to vector<16x128xbf16>
    %c16_49 = arith.constant 16 : index
    %c128_50 = arith.constant 128 : index
    %73 = vector.load %arg13[%c16_49, %c128_50] : memref<32x640xbf16, #tpu.memory_space<vmem>>, vector<16x128xbf16>
    tpu.vector_store %arg13[%c16_49, %c128_50], %72 {strides = array<i32>} : memref<32x640xbf16, #tpu.memory_space<vmem>>, vector<16x128xbf16>,
    %74 = vector.extract_strided_slice %65 {offsets = [0, 0], sizes = [16, 128], strides = [1, 1]} : vector<24x128xf32> to vector<16x128xf32>
    %75 = arith.truncf %74 : vector<16x128xf32> to vector<16x128xbf16>
    %c16_51 = arith.constant 16 : index
    %c256_52 = arith.constant 256 : index
    %76 = vector.load %arg13[%c16_51, %c256_52] : memref<32x640xbf16, #tpu.memory_space<vmem>>, vector<16x128xbf16>
    tpu.vector_store %arg13[%c16_51, %c256_52], %75 {strides = array<i32>} : memref<32x640xbf16, #tpu.memory_space<vmem>>, vector<16x128xbf16>,
    %c23_i32_53 = arith.constant 23 : i32
    %77 = tpu.dynamic_rotate %65 by %c23_i32_53 dim 0 : vector<24x128xf32>, i32 -> vector<24x128xf32>
    %78 = vector.extract_strided_slice %77 {offsets = [0, 0], sizes = [16, 128], strides = [1, 1]} : vector<24x128xf32> to vector<16x128xf32>
    %79 = arith.truncf %78 : vector<16x128xf32> to vector<16x128xbf16>
    %c16_54 = arith.constant 16 : index
    %c384_55 = arith.constant 384 : index
    %80 = vector.load %arg13[%c16_54, %c384_55] : memref<32x640xbf16, #tpu.memory_space<vmem>>, vector<16x128xbf16>
    tpu.vector_store %arg13[%c16_54, %c384_55], %79 {strides = array<i32>} : memref<32x640xbf16, #tpu.memory_space<vmem>>, vector<16x128xbf16>,
    %c22_i32_56 = arith.constant 22 : i32
    %81 = tpu.dynamic_rotate %65 by %c22_i32_56 dim 0 : vector<24x128xf32>, i32 -> vector<24x128xf32>
    %82 = vector.extract_strided_slice %81 {offsets = [0, 0], sizes = [16, 128], strides = [1, 1]} : vector<24x128xf32> to vector<16x128xf32>
    %83 = arith.truncf %82 : vector<16x128xf32> to vector<16x128xbf16>
    %c16_57 = arith.constant 16 : index
    %c512_58 = arith.constant 512 : index
    %84 = vector.load %arg13[%c16_57, %c512_58] : memref<32x640xbf16, #tpu.memory_space<vmem>>, vector<16x128xbf16>
    tpu.vector_store %arg13[%c16_57, %c512_58], %83 {strides = array<i32>} : memref<32x640xbf16, #tpu.memory_space<vmem>>, vector<16x128xbf16>,
    %c0_59 = arith.constant 0 : index
    %c0_60 = arith.constant 0 : index
    %85 = vector.load %arg13[%c0_59, %c0_60] : memref<32x640xbf16, #tpu.memory_space<vmem>>, vector<32x640xbf16>
    %c0_61 = arith.constant 0 : index
    %c0_62 = arith.constant 0 : index
    %86 = vector.load %arg3[%c0_61, %c0_62] : memref<640x128xbf16, #tpu.memory_space<vmem>>, vector<640x128xbf16>
    %cst_63 = arith.constant dense<0.000000e+00> : vector<32x128xf32>
    %87 = tpu.matmul %85, %86, %cst_63 {dimension_numbers = #tpu.dot_dimension_numbers<[1], [0], [0], [1], [0, 0, 1, 1], [], []>} : vector<32x640xbf16>, vector<640x128xbf16>, vector<32x128xf32> -> vector<32x128xf32>
    %c0_64 = arith.constant 0 : index
    %c0_65 = arith.constant 0 : index
    %88 = vector.load %arg4[%c0_64, %c0_65] : memref<1x128xf32, #tpu.memory_space<vmem>>, vector<1x128xf32>
    %89 = vector.broadcast %88 : vector<1x128xf32> to vector<32x128xf32>
    %90 = arith.addf %87, %89 : vector<32x128xf32>
    %cst_66 = arith.constant 0.000000e+00 : f32
    %91 = vector.broadcast %cst_66 : f32 to vector<32x128xf32>
    %92 = arith.maximumf %90, %91 : vector<32x128xf32>
    %93 = vector.extract_strided_slice %92 {offsets = [0, 0], sizes = [16, 128], strides = [1, 1]} : vector<32x128xf32> to vector<16x128xf32>
    %c0_67 = arith.constant 0 : index
    %c0_68 = arith.constant 0 : index
    %c0_69 = arith.constant 0 : index
    %94 = vector.load %arg12[%c0_67, %c0_68, %c0_69] : memref<2x24x128xf32, #tpu.memory_space<vmem>>, vector<1x16x128xf32>
    %95 = vector.shape_cast %94 : vector<1x16x128xf32> to vector<16x128xf32>
    %96 = vector.shape_cast %93 : vector<16x128xf32> to vector<1x16x128xf32>
    tpu.vector_store %arg12[%c0_67, %c0_68, %c0_69], %96 {strides = array<i32>} : memref<2x24x128xf32, #tpu.memory_space<vmem>>, vector<1x16x128xf32>,
    %cst_70 = arith.constant 0.000000e+00 : f32
    %97 = vector.broadcast %cst_70 : f32 to vector<8x128xf32>
    %c0_71 = arith.constant 0 : index
    %c8_72 = arith.constant 8 : index
    %c0_73 = arith.constant 0 : index
    %98 = vector.load %arg12[%c0_71, %c8_72, %c0_73] : memref<2x24x128xf32, #tpu.memory_space<vmem>>, vector<1x8x128xf32>
    %99 = vector.shape_cast %98 : vector<1x8x128xf32> to vector<8x128xf32>
    %100 = vector.shape_cast %97 : vector<8x128xf32> to vector<1x8x128xf32>
    tpu.vector_store %arg12[%c0_71, %c8_72, %c0_73], %100 {strides = array<i32>} : memref<2x24x128xf32, #tpu.memory_space<vmem>>, vector<1x8x128xf32>,
    %101 = vector.extract_strided_slice %92 {offsets = [16, 0], sizes = [16, 128], strides = [1, 1]} : vector<32x128xf32> to vector<16x128xf32>
    %c1_74 = arith.constant 1 : index
    %c0_75 = arith.constant 0 : index
    %c0_76 = arith.constant 0 : index
    %102 = vector.load %arg12[%c1_74, %c0_75, %c0_76] : memref<2x24x128xf32, #tpu.memory_space<vmem>>, vector<1x16x128xf32>
    %103 = vector.shape_cast %102 : vector<1x16x128xf32> to vector<16x128xf32>
    %104 = vector.shape_cast %101 : vector<16x128xf32> to vector<1x16x128xf32>
    tpu.vector_store %arg12[%c1_74, %c0_75, %c0_76], %104 {strides = array<i32>} : memref<2x24x128xf32, #tpu.memory_space<vmem>>, vector<1x16x128xf32>,
    %cst_77 = arith.constant 0.000000e+00 : f32
    %105 = vector.broadcast %cst_77 : f32 to vector<8x128xf32>
    %c1_78 = arith.constant 1 : index
    %c8_79 = arith.constant 8 : index
    %c0_80 = arith.constant 0 : index
    %106 = vector.load %arg12[%c1_78, %c8_79, %c0_80] : memref<2x24x128xf32, #tpu.memory_space<vmem>>, vector<1x8x128xf32>
    %107 = vector.shape_cast %106 : vector<1x8x128xf32> to vector<8x128xf32>
    %108 = vector.shape_cast %105 : vector<8x128xf32> to vector<1x8x128xf32>
    tpu.vector_store %arg12[%c1_78, %c8_79, %c0_80], %108 {strides = array<i32>} : memref<2x24x128xf32, #tpu.memory_space<vmem>>, vector<1x8x128xf32>,
    %c0_81 = arith.constant 0 : index
    %c0_82 = arith.constant 0 : index
    %c0_83 = arith.constant 0 : index
    %109 = vector.load %arg12[%c0_81, %c0_82, %c0_83] : memref<2x24x128xf32, #tpu.memory_space<vmem>>, vector<1x24x128xf32>
    %110 = vector.shape_cast %109 : vector<1x24x128xf32> to vector<24x128xf32>
    %c2_i32_84 = arith.constant 2 : i32
    %111 = tpu.dynamic_rotate %110 by %c2_i32_84 dim 0 : vector<24x128xf32>, i32 -> vector<24x128xf32>
    %112 = vector.extract_strided_slice %111 {offsets = [0, 0], sizes = [16, 128], strides = [1, 1]} : vector<24x128xf32> to vector<16x128xf32>
    %113 = arith.truncf %112 : vector<16x128xf32> to vector<16x128xbf16>
    %c0_85 = arith.constant 0 : index
    %c0_86 = arith.constant 0 : index
    %114 = vector.load %arg13[%c0_85, %c0_86] : memref<32x640xbf16, #tpu.memory_space<vmem>>, vector<16x128xbf16>
    tpu.vector_store %arg13[%c0_85, %c0_86], %113 {strides = array<i32>} : memref<32x640xbf16, #tpu.memory_space<vmem>>, vector<16x128xbf16>,
    %c1_i32_87 = arith.constant 1 : i32
    %115 = tpu.dynamic_rotate %110 by %c1_i32_87 dim 0 : vector<24x128xf32>, i32 -> vector<24x128xf32>
    %116 = vector.extract_strided_slice %115 {offsets = [0, 0], sizes = [16, 128], strides = [1, 1]} : vector<24x128xf32> to vector<16x128xf32>
    %117 = arith.truncf %116 : vector<16x128xf32> to vector<16x128xbf16>
    %c0_88 = arith.constant 0 : index
    %c128_89 = arith.constant 128 : index
    %118 = vector.load %arg13[%c0_88, %c128_89] : memref<32x640xbf16, #tpu.memory_space<vmem>>, vector<16x128xbf16>
    tpu.vector_store %arg13[%c0_88, %c128_89], %117 {strides = array<i32>} : memref<32x640xbf16, #tpu.memory_space<vmem>>, vector<16x128xbf16>,
    %119 = vector.extract_strided_slice %110 {offsets = [0, 0], sizes = [16, 128], strides = [1, 1]} : vector<24x128xf32> to vector<16x128xf32>
    %120 = arith.truncf %119 : vector<16x128xf32> to vector<16x128xbf16>
    %c0_90 = arith.constant 0 : index
    %c256_91 = arith.constant 256 : index
    %121 = vector.load %arg13[%c0_90, %c256_91] : memref<32x640xbf16, #tpu.memory_space<vmem>>, vector<16x128xbf16>
    tpu.vector_store %arg13[%c0_90, %c256_91], %120 {strides = array<i32>} : memref<32x640xbf16, #tpu.memory_space<vmem>>, vector<16x128xbf16>,
    %c23_i32_92 = arith.constant 23 : i32
    %122 = tpu.dynamic_rotate %110 by %c23_i32_92 dim 0 : vector<24x128xf32>, i32 -> vector<24x128xf32>
    %123 = vector.extract_strided_slice %122 {offsets = [0, 0], sizes = [16, 128], strides = [1, 1]} : vector<24x128xf32> to vector<16x128xf32>
    %124 = arith.truncf %123 : vector<16x128xf32> to vector<16x128xbf16>
    %c0_93 = arith.constant 0 : index
    %c384_94 = arith.constant 384 : index
    %125 = vector.load %arg13[%c0_93, %c384_94] : memref<32x640xbf16, #tpu.memory_space<vmem>>, vector<16x128xbf16>
    tpu.vector_store %arg13[%c0_93, %c384_94], %124 {strides = array<i32>} : memref<32x640xbf16, #tpu.memory_space<vmem>>, vector<16x128xbf16>,
    %c22_i32_95 = arith.constant 22 : i32
    %126 = tpu.dynamic_rotate %110 by %c22_i32_95 dim 0 : vector<24x128xf32>, i32 -> vector<24x128xf32>
    %127 = vector.extract_strided_slice %126 {offsets = [0, 0], sizes = [16, 128], strides = [1, 1]} : vector<24x128xf32> to vector<16x128xf32>
    %128 = arith.truncf %127 : vector<16x128xf32> to vector<16x128xbf16>
    %c0_96 = arith.constant 0 : index
    %c512_97 = arith.constant 512 : index
    %129 = vector.load %arg13[%c0_96, %c512_97] : memref<32x640xbf16, #tpu.memory_space<vmem>>, vector<16x128xbf16>
    tpu.vector_store %arg13[%c0_96, %c512_97], %128 {strides = array<i32>} : memref<32x640xbf16, #tpu.memory_space<vmem>>, vector<16x128xbf16>,
    %c1_98 = arith.constant 1 : index
    %c0_99 = arith.constant 0 : index
    %c0_100 = arith.constant 0 : index
    %130 = vector.load %arg12[%c1_98, %c0_99, %c0_100] : memref<2x24x128xf32, #tpu.memory_space<vmem>>, vector<1x24x128xf32>
    %131 = vector.shape_cast %130 : vector<1x24x128xf32> to vector<24x128xf32>
    %c2_i32_101 = arith.constant 2 : i32
    %132 = tpu.dynamic_rotate %131 by %c2_i32_101 dim 0 : vector<24x128xf32>, i32 -> vector<24x128xf32>
    %133 = vector.extract_strided_slice %132 {offsets = [0, 0], sizes = [16, 128], strides = [1, 1]} : vector<24x128xf32> to vector<16x128xf32>
    %134 = arith.truncf %133 : vector<16x128xf32> to vector<16x128xbf16>
    %c16_102 = arith.constant 16 : index
    %c0_103 = arith.constant 0 : index
    %135 = vector.load %arg13[%c16_102, %c0_103] : memref<32x640xbf16, #tpu.memory_space<vmem>>, vector<16x128xbf16>
    tpu.vector_store %arg13[%c16_102, %c0_103], %134 {strides = array<i32>} : memref<32x640xbf16, #tpu.memory_space<vmem>>, vector<16x128xbf16>,
    %c1_i32_104 = arith.constant 1 : i32
    %136 = tpu.dynamic_rotate %131 by %c1_i32_104 dim 0 : vector<24x128xf32>, i32 -> vector<24x128xf32>
    %137 = vector.extract_strided_slice %136 {offsets = [0, 0], sizes = [16, 128], strides = [1, 1]} : vector<24x128xf32> to vector<16x128xf32>
    %138 = arith.truncf %137 : vector<16x128xf32> to vector<16x128xbf16>
    %c16_105 = arith.constant 16 : index
    %c128_106 = arith.constant 128 : index
    %139 = vector.load %arg13[%c16_105, %c128_106] : memref<32x640xbf16, #tpu.memory_space<vmem>>, vector<16x128xbf16>
    tpu.vector_store %arg13[%c16_105, %c128_106], %138 {strides = array<i32>} : memref<32x640xbf16, #tpu.memory_space<vmem>>, vector<16x128xbf16>,
    %140 = vector.extract_strided_slice %131 {offsets = [0, 0], sizes = [16, 128], strides = [1, 1]} : vector<24x128xf32> to vector<16x128xf32>
    %141 = arith.truncf %140 : vector<16x128xf32> to vector<16x128xbf16>
    %c16_107 = arith.constant 16 : index
    %c256_108 = arith.constant 256 : index
    %142 = vector.load %arg13[%c16_107, %c256_108] : memref<32x640xbf16, #tpu.memory_space<vmem>>, vector<16x128xbf16>
    tpu.vector_store %arg13[%c16_107, %c256_108], %141 {strides = array<i32>} : memref<32x640xbf16, #tpu.memory_space<vmem>>, vector<16x128xbf16>,
    %c23_i32_109 = arith.constant 23 : i32
    %143 = tpu.dynamic_rotate %131 by %c23_i32_109 dim 0 : vector<24x128xf32>, i32 -> vector<24x128xf32>
    %144 = vector.extract_strided_slice %143 {offsets = [0, 0], sizes = [16, 128], strides = [1, 1]} : vector<24x128xf32> to vector<16x128xf32>
    %145 = arith.truncf %144 : vector<16x128xf32> to vector<16x128xbf16>
    %c16_110 = arith.constant 16 : index
    %c384_111 = arith.constant 384 : index
    %146 = vector.load %arg13[%c16_110, %c384_111] : memref<32x640xbf16, #tpu.memory_space<vmem>>, vector<16x128xbf16>
    tpu.vector_store %arg13[%c16_110, %c384_111], %145 {strides = array<i32>} : memref<32x640xbf16, #tpu.memory_space<vmem>>, vector<16x128xbf16>,
    %c22_i32_112 = arith.constant 22 : i32
    %147 = tpu.dynamic_rotate %131 by %c22_i32_112 dim 0 : vector<24x128xf32>, i32 -> vector<24x128xf32>
    %148 = vector.extract_strided_slice %147 {offsets = [0, 0], sizes = [16, 128], strides = [1, 1]} : vector<24x128xf32> to vector<16x128xf32>
    %149 = arith.truncf %148 : vector<16x128xf32> to vector<16x128xbf16>
    %c16_113 = arith.constant 16 : index
    %c512_114 = arith.constant 512 : index
    %150 = vector.load %arg13[%c16_113, %c512_114] : memref<32x640xbf16, #tpu.memory_space<vmem>>, vector<16x128xbf16>
    tpu.vector_store %arg13[%c16_113, %c512_114], %149 {strides = array<i32>} : memref<32x640xbf16, #tpu.memory_space<vmem>>, vector<16x128xbf16>,
    %c0_115 = arith.constant 0 : index
    %c0_116 = arith.constant 0 : index
    %151 = vector.load %arg13[%c0_115, %c0_116] : memref<32x640xbf16, #tpu.memory_space<vmem>>, vector<32x640xbf16>
    %c0_117 = arith.constant 0 : index
    %c0_118 = arith.constant 0 : index
    %152 = vector.load %arg5[%c0_117, %c0_118] : memref<640x128xbf16, #tpu.memory_space<vmem>>, vector<640x128xbf16>
    %cst_119 = arith.constant dense<0.000000e+00> : vector<32x128xf32>
    %153 = tpu.matmul %151, %152, %cst_119 {dimension_numbers = #tpu.dot_dimension_numbers<[1], [0], [0], [1], [0, 0, 1, 1], [], []>} : vector<32x640xbf16>, vector<640x128xbf16>, vector<32x128xf32> -> vector<32x128xf32>
    %c0_120 = arith.constant 0 : index
    %c0_121 = arith.constant 0 : index
    %154 = vector.load %arg6[%c0_120, %c0_121] : memref<1x128xf32, #tpu.memory_space<vmem>>, vector<1x128xf32>
    %155 = vector.broadcast %154 : vector<1x128xf32> to vector<32x128xf32>
    %156 = arith.addf %153, %155 : vector<32x128xf32>
    %cst_122 = arith.constant 0.000000e+00 : f32
    %157 = vector.broadcast %cst_122 : f32 to vector<32x128xf32>
    %158 = arith.maximumf %156, %157 : vector<32x128xf32>
    %159 = vector.extract_strided_slice %158 {offsets = [0, 0], sizes = [16, 128], strides = [1, 1]} : vector<32x128xf32> to vector<16x128xf32>
    %c0_123 = arith.constant 0 : index
    %c0_124 = arith.constant 0 : index
    %c0_125 = arith.constant 0 : index
    %160 = vector.load %arg12[%c0_123, %c0_124, %c0_125] : memref<2x24x128xf32, #tpu.memory_space<vmem>>, vector<1x16x128xf32>
    %161 = vector.shape_cast %160 : vector<1x16x128xf32> to vector<16x128xf32>
    %162 = vector.shape_cast %159 : vector<16x128xf32> to vector<1x16x128xf32>
    tpu.vector_store %arg12[%c0_123, %c0_124, %c0_125], %162 {strides = array<i32>} : memref<2x24x128xf32, #tpu.memory_space<vmem>>, vector<1x16x128xf32>,
    %cst_126 = arith.constant 0.000000e+00 : f32
    %163 = vector.broadcast %cst_126 : f32 to vector<8x128xf32>
    %c0_127 = arith.constant 0 : index
    %c8_128 = arith.constant 8 : index
    %c0_129 = arith.constant 0 : index
    %164 = vector.load %arg12[%c0_127, %c8_128, %c0_129] : memref<2x24x128xf32, #tpu.memory_space<vmem>>, vector<1x8x128xf32>
    %165 = vector.shape_cast %164 : vector<1x8x128xf32> to vector<8x128xf32>
    %166 = vector.shape_cast %163 : vector<8x128xf32> to vector<1x8x128xf32>
    tpu.vector_store %arg12[%c0_127, %c8_128, %c0_129], %166 {strides = array<i32>} : memref<2x24x128xf32, #tpu.memory_space<vmem>>, vector<1x8x128xf32>,
    %167 = vector.extract_strided_slice %158 {offsets = [16, 0], sizes = [16, 128], strides = [1, 1]} : vector<32x128xf32> to vector<16x128xf32>
    %c1_130 = arith.constant 1 : index
    %c0_131 = arith.constant 0 : index
    %c0_132 = arith.constant 0 : index
    %168 = vector.load %arg12[%c1_130, %c0_131, %c0_132] : memref<2x24x128xf32, #tpu.memory_space<vmem>>, vector<1x16x128xf32>
    %169 = vector.shape_cast %168 : vector<1x16x128xf32> to vector<16x128xf32>
    %170 = vector.shape_cast %167 : vector<16x128xf32> to vector<1x16x128xf32>
    tpu.vector_store %arg12[%c1_130, %c0_131, %c0_132], %170 {strides = array<i32>} : memref<2x24x128xf32, #tpu.memory_space<vmem>>, vector<1x16x128xf32>,
    %cst_133 = arith.constant 0.000000e+00 : f32
    %171 = vector.broadcast %cst_133 : f32 to vector<8x128xf32>
    %c1_134 = arith.constant 1 : index
    %c8_135 = arith.constant 8 : index
    %c0_136 = arith.constant 0 : index
    %172 = vector.load %arg12[%c1_134, %c8_135, %c0_136] : memref<2x24x128xf32, #tpu.memory_space<vmem>>, vector<1x8x128xf32>
    %173 = vector.shape_cast %172 : vector<1x8x128xf32> to vector<8x128xf32>
    %174 = vector.shape_cast %171 : vector<8x128xf32> to vector<1x8x128xf32>
    tpu.vector_store %arg12[%c1_134, %c8_135, %c0_136], %174 {strides = array<i32>} : memref<2x24x128xf32, #tpu.memory_space<vmem>>, vector<1x8x128xf32>,
    %c0_137 = arith.constant 0 : index
    %c0_138 = arith.constant 0 : index
    %c0_139 = arith.constant 0 : index
    %175 = vector.load %arg12[%c0_137, %c0_138, %c0_139] : memref<2x24x128xf32, #tpu.memory_space<vmem>>, vector<1x24x128xf32>
    %176 = vector.shape_cast %175 : vector<1x24x128xf32> to vector<24x128xf32>
    %c2_i32_140 = arith.constant 2 : i32
    %177 = tpu.dynamic_rotate %176 by %c2_i32_140 dim 0 : vector<24x128xf32>, i32 -> vector<24x128xf32>
    %178 = vector.extract_strided_slice %177 {offsets = [0, 0], sizes = [16, 128], strides = [1, 1]} : vector<24x128xf32> to vector<16x128xf32>
    %179 = arith.truncf %178 : vector<16x128xf32> to vector<16x128xbf16>
    %c0_141 = arith.constant 0 : index
    %c0_142 = arith.constant 0 : index
    %180 = vector.load %arg13[%c0_141, %c0_142] : memref<32x640xbf16, #tpu.memory_space<vmem>>, vector<16x128xbf16>
    tpu.vector_store %arg13[%c0_141, %c0_142], %179 {strides = array<i32>} : memref<32x640xbf16, #tpu.memory_space<vmem>>, vector<16x128xbf16>,
    %c1_i32_143 = arith.constant 1 : i32
    %181 = tpu.dynamic_rotate %176 by %c1_i32_143 dim 0 : vector<24x128xf32>, i32 -> vector<24x128xf32>
    %182 = vector.extract_strided_slice %181 {offsets = [0, 0], sizes = [16, 128], strides = [1, 1]} : vector<24x128xf32> to vector<16x128xf32>
    %183 = arith.truncf %182 : vector<16x128xf32> to vector<16x128xbf16>
    %c0_144 = arith.constant 0 : index
    %c128_145 = arith.constant 128 : index
    %184 = vector.load %arg13[%c0_144, %c128_145] : memref<32x640xbf16, #tpu.memory_space<vmem>>, vector<16x128xbf16>
    tpu.vector_store %arg13[%c0_144, %c128_145], %183 {strides = array<i32>} : memref<32x640xbf16, #tpu.memory_space<vmem>>, vector<16x128xbf16>,
    %185 = vector.extract_strided_slice %176 {offsets = [0, 0], sizes = [16, 128], strides = [1, 1]} : vector<24x128xf32> to vector<16x128xf32>
    %186 = arith.truncf %185 : vector<16x128xf32> to vector<16x128xbf16>
    %c0_146 = arith.constant 0 : index
    %c256_147 = arith.constant 256 : index
    %187 = vector.load %arg13[%c0_146, %c256_147] : memref<32x640xbf16, #tpu.memory_space<vmem>>, vector<16x128xbf16>
    tpu.vector_store %arg13[%c0_146, %c256_147], %186 {strides = array<i32>} : memref<32x640xbf16, #tpu.memory_space<vmem>>, vector<16x128xbf16>,
    %c23_i32_148 = arith.constant 23 : i32
    %188 = tpu.dynamic_rotate %176 by %c23_i32_148 dim 0 : vector<24x128xf32>, i32 -> vector<24x128xf32>
    %189 = vector.extract_strided_slice %188 {offsets = [0, 0], sizes = [16, 128], strides = [1, 1]} : vector<24x128xf32> to vector<16x128xf32>
    %190 = arith.truncf %189 : vector<16x128xf32> to vector<16x128xbf16>
    %c0_149 = arith.constant 0 : index
    %c384_150 = arith.constant 384 : index
    %191 = vector.load %arg13[%c0_149, %c384_150] : memref<32x640xbf16, #tpu.memory_space<vmem>>, vector<16x128xbf16>
    tpu.vector_store %arg13[%c0_149, %c384_150], %190 {strides = array<i32>} : memref<32x640xbf16, #tpu.memory_space<vmem>>, vector<16x128xbf16>,
    %c22_i32_151 = arith.constant 22 : i32
    %192 = tpu.dynamic_rotate %176 by %c22_i32_151 dim 0 : vector<24x128xf32>, i32 -> vector<24x128xf32>
    %193 = vector.extract_strided_slice %192 {offsets = [0, 0], sizes = [16, 128], strides = [1, 1]} : vector<24x128xf32> to vector<16x128xf32>
    %194 = arith.truncf %193 : vector<16x128xf32> to vector<16x128xbf16>
    %c0_152 = arith.constant 0 : index
    %c512_153 = arith.constant 512 : index
    %195 = vector.load %arg13[%c0_152, %c512_153] : memref<32x640xbf16, #tpu.memory_space<vmem>>, vector<16x128xbf16>
    tpu.vector_store %arg13[%c0_152, %c512_153], %194 {strides = array<i32>} : memref<32x640xbf16, #tpu.memory_space<vmem>>, vector<16x128xbf16>,
    %c1_154 = arith.constant 1 : index
    %c0_155 = arith.constant 0 : index
    %c0_156 = arith.constant 0 : index
    %196 = vector.load %arg12[%c1_154, %c0_155, %c0_156] : memref<2x24x128xf32, #tpu.memory_space<vmem>>, vector<1x24x128xf32>
    %197 = vector.shape_cast %196 : vector<1x24x128xf32> to vector<24x128xf32>
    %c2_i32_157 = arith.constant 2 : i32
    %198 = tpu.dynamic_rotate %197 by %c2_i32_157 dim 0 : vector<24x128xf32>, i32 -> vector<24x128xf32>
    %199 = vector.extract_strided_slice %198 {offsets = [0, 0], sizes = [16, 128], strides = [1, 1]} : vector<24x128xf32> to vector<16x128xf32>
    %200 = arith.truncf %199 : vector<16x128xf32> to vector<16x128xbf16>
    %c16_158 = arith.constant 16 : index
    %c0_159 = arith.constant 0 : index
    %201 = vector.load %arg13[%c16_158, %c0_159] : memref<32x640xbf16, #tpu.memory_space<vmem>>, vector<16x128xbf16>
    tpu.vector_store %arg13[%c16_158, %c0_159], %200 {strides = array<i32>} : memref<32x640xbf16, #tpu.memory_space<vmem>>, vector<16x128xbf16>,
    %c1_i32_160 = arith.constant 1 : i32
    %202 = tpu.dynamic_rotate %197 by %c1_i32_160 dim 0 : vector<24x128xf32>, i32 -> vector<24x128xf32>
    %203 = vector.extract_strided_slice %202 {offsets = [0, 0], sizes = [16, 128], strides = [1, 1]} : vector<24x128xf32> to vector<16x128xf32>
    %204 = arith.truncf %203 : vector<16x128xf32> to vector<16x128xbf16>
    %c16_161 = arith.constant 16 : index
    %c128_162 = arith.constant 128 : index
    %205 = vector.load %arg13[%c16_161, %c128_162] : memref<32x640xbf16, #tpu.memory_space<vmem>>, vector<16x128xbf16>
    tpu.vector_store %arg13[%c16_161, %c128_162], %204 {strides = array<i32>} : memref<32x640xbf16, #tpu.memory_space<vmem>>, vector<16x128xbf16>,
    %206 = vector.extract_strided_slice %197 {offsets = [0, 0], sizes = [16, 128], strides = [1, 1]} : vector<24x128xf32> to vector<16x128xf32>
    %207 = arith.truncf %206 : vector<16x128xf32> to vector<16x128xbf16>
    %c16_163 = arith.constant 16 : index
    %c256_164 = arith.constant 256 : index
    %208 = vector.load %arg13[%c16_163, %c256_164] : memref<32x640xbf16, #tpu.memory_space<vmem>>, vector<16x128xbf16>
    tpu.vector_store %arg13[%c16_163, %c256_164], %207 {strides = array<i32>} : memref<32x640xbf16, #tpu.memory_space<vmem>>, vector<16x128xbf16>,
    %c23_i32_165 = arith.constant 23 : i32
    %209 = tpu.dynamic_rotate %197 by %c23_i32_165 dim 0 : vector<24x128xf32>, i32 -> vector<24x128xf32>
    %210 = vector.extract_strided_slice %209 {offsets = [0, 0], sizes = [16, 128], strides = [1, 1]} : vector<24x128xf32> to vector<16x128xf32>
    %211 = arith.truncf %210 : vector<16x128xf32> to vector<16x128xbf16>
    %c16_166 = arith.constant 16 : index
    %c384_167 = arith.constant 384 : index
    %212 = vector.load %arg13[%c16_166, %c384_167] : memref<32x640xbf16, #tpu.memory_space<vmem>>, vector<16x128xbf16>
    tpu.vector_store %arg13[%c16_166, %c384_167], %211 {strides = array<i32>} : memref<32x640xbf16, #tpu.memory_space<vmem>>, vector<16x128xbf16>,
    %c22_i32_168 = arith.constant 22 : i32
    %213 = tpu.dynamic_rotate %197 by %c22_i32_168 dim 0 : vector<24x128xf32>, i32 -> vector<24x128xf32>
    %214 = vector.extract_strided_slice %213 {offsets = [0, 0], sizes = [16, 128], strides = [1, 1]} : vector<24x128xf32> to vector<16x128xf32>
    %215 = arith.truncf %214 : vector<16x128xf32> to vector<16x128xbf16>
    %c16_169 = arith.constant 16 : index
    %c512_170 = arith.constant 512 : index
    %216 = vector.load %arg13[%c16_169, %c512_170] : memref<32x640xbf16, #tpu.memory_space<vmem>>, vector<16x128xbf16>
    tpu.vector_store %arg13[%c16_169, %c512_170], %215 {strides = array<i32>} : memref<32x640xbf16, #tpu.memory_space<vmem>>, vector<16x128xbf16>,
    %c0_171 = arith.constant 0 : index
    %c0_172 = arith.constant 0 : index
    %217 = vector.load %arg13[%c0_171, %c0_172] : memref<32x640xbf16, #tpu.memory_space<vmem>>, vector<32x640xbf16>
    %c0_173 = arith.constant 0 : index
    %c0_174 = arith.constant 0 : index
    %218 = vector.load %arg7[%c0_173, %c0_174] : memref<640x128xbf16, #tpu.memory_space<vmem>>, vector<640x128xbf16>
    %cst_175 = arith.constant dense<0.000000e+00> : vector<32x128xf32>
    %219 = tpu.matmul %217, %218, %cst_175 {dimension_numbers = #tpu.dot_dimension_numbers<[1], [0], [0], [1], [0, 0, 1, 1], [], []>} : vector<32x640xbf16>, vector<640x128xbf16>, vector<32x128xf32> -> vector<32x128xf32>
    %c0_176 = arith.constant 0 : index
    %c0_177 = arith.constant 0 : index
    %220 = vector.load %arg8[%c0_176, %c0_177] : memref<1x128xf32, #tpu.memory_space<vmem>>, vector<1x128xf32>
    %221 = vector.broadcast %220 : vector<1x128xf32> to vector<32x128xf32>
    %222 = arith.addf %219, %221 : vector<32x128xf32>
    %cst_178 = arith.constant 0.000000e+00 : f32
    %223 = vector.broadcast %cst_178 : f32 to vector<32x128xf32>
    %224 = arith.maximumf %222, %223 : vector<32x128xf32>
    %225 = arith.truncf %224 : vector<32x128xf32> to vector<32x128xbf16>
    %c0_179 = arith.constant 0 : index
    %c0_180 = arith.constant 0 : index
    %226 = vector.load %arg9[%c0_179, %c0_180] : memref<128x128xbf16, #tpu.memory_space<vmem>>, vector<128x128xbf16>
    %cst_181 = arith.constant dense<0.000000e+00> : vector<32x128xf32>
    %227 = tpu.matmul %225, %226, %cst_181 {dimension_numbers = #tpu.dot_dimension_numbers<[1], [0], [0], [1], [0, 0, 1, 1], [], []>} : vector<32x128xbf16>, vector<128x128xbf16>, vector<32x128xf32> -> vector<32x128xf32>
    %c0_182 = arith.constant 0 : index
    %c0_183 = arith.constant 0 : index
    %228 = vector.load %arg10[%c0_182, %c0_183] : memref<1x128xf32, #tpu.memory_space<vmem>>, vector<1x128xf32>
    %229 = vector.broadcast %228 : vector<1x128xf32> to vector<32x128xf32>
    %230 = arith.addf %227, %229 : vector<32x128xf32>
    %231 = vector.extract_strided_slice %230 {offsets = [0, 0], sizes = [16, 128], strides = [1, 1]} : vector<32x128xf32> to vector<16x128xf32>
    %c0_184 = arith.constant 0 : index
    %c0_185 = arith.constant 0 : index
    %c0_186 = arith.constant 0 : index
    %232 = vector.load %arg11[%c0_184, %c0_185, %c0_186] : memref<2x16x128xf32, #tpu.memory_space<vmem>>, vector<1x16x128xf32>
    %233 = vector.shape_cast %232 : vector<1x16x128xf32> to vector<16x128xf32>
    %234 = vector.shape_cast %231 : vector<16x128xf32> to vector<1x16x128xf32>
    tpu.vector_store %arg11[%c0_184, %c0_185, %c0_186], %234 {strides = array<i32>} : memref<2x16x128xf32, #tpu.memory_space<vmem>>, vector<1x16x128xf32>,
    %235 = vector.extract_strided_slice %230 {offsets = [16, 0], sizes = [16, 128], strides = [1, 1]} : vector<32x128xf32> to vector<16x128xf32>
    %c1_187 = arith.constant 1 : index
    %c0_188 = arith.constant 0 : index
    %c0_189 = arith.constant 0 : index
    %236 = vector.load %arg11[%c1_187, %c0_188, %c0_189] : memref<2x16x128xf32, #tpu.memory_space<vmem>>, vector<1x16x128xf32>
    %237 = vector.shape_cast %236 : vector<1x16x128xf32> to vector<16x128xf32>
    %238 = vector.shape_cast %235 : vector<16x128xf32> to vector<1x16x128xf32>
    tpu.vector_store %arg11[%c1_187, %c0_188, %c0_189], %238 {strides = array<i32>} : memref<2x16x128xf32, #tpu.memory_space<vmem>>, vector<1x16x128xf32>,
    return
  }
  func.func @transform_0(%arg0: i32) -> (i32, i32, i32) {
    %c0_i32 = arith.constant 0 : i32
    %c0_i32_0 = arith.constant 0 : i32
    %c0_i32_1 = arith.constant 0 : i32
    return %arg0, %c0_i32, %c0_i32_0 : i32, i32, i32
  }
  func.func @transform_1(%arg0: i32) -> (i32, i32) {
    %c0_i32 = arith.constant 0 : i32
    %c0_i32_0 = arith.constant 0 : i32
    %c0_i32_1 = arith.constant 0 : i32
    return %c0_i32, %c0_i32_0 : i32, i32
  }
  func.func @transform_2(%arg0: i32) -> (i32, i32) {
    %c0_i32 = arith.constant 0 : i32
    %c0_i32_0 = arith.constant 0 : i32
    %c0_i32_1 = arith.constant 0 : i32
    return %c0_i32, %c0_i32_0 : i32, i32
  }
  func.func @transform_3(%arg0: i32) -> (i32, i32) {
    %c0_i32 = arith.constant 0 : i32
    %c0_i32_0 = arith.constant 0 : i32
    %c0_i32_1 = arith.constant 0 : i32
    return %c0_i32, %c0_i32_0 : i32, i32
  }
  func.func @transform_4(%arg0: i32) -> (i32, i32) {
    %c0_i32 = arith.constant 0 : i32
    %c0_i32_0 = arith.constant 0 : i32
    %c0_i32_1 = arith.constant 0 : i32
    return %c0_i32, %c0_i32_0 : i32, i32
  }
  func.func @transform_5(%arg0: i32) -> (i32, i32) {
    %c0_i32 = arith.constant 0 : i32
    %c0_i32_0 = arith.constant 0 : i32
    %c0_i32_1 = arith.constant 0 : i32
    return %c0_i32, %c0_i32_0 : i32, i32
  }
  func.func @transform_6(%arg0: i32) -> (i32, i32) {
    %c0_i32 = arith.constant 0 : i32
    %c0_i32_0 = arith.constant 0 : i32
    %c0_i32_1 = arith.constant 0 : i32
    return %c0_i32, %c0_i32_0 : i32, i32
  }
  func.func @transform_7(%arg0: i32) -> (i32, i32) {
    %c0_i32 = arith.constant 0 : i32
    %c0_i32_0 = arith.constant 0 : i32
    %c0_i32_1 = arith.constant 0 : i32
    return %c0_i32, %c0_i32_0 : i32, i32
  }
  func.func @transform_8(%arg0: i32) -> (i32, i32) {
    %c0_i32 = arith.constant 0 : i32
    %c0_i32_0 = arith.constant 0 : i32
    %c0_i32_1 = arith.constant 0 : i32
    return %c0_i32, %c0_i32_0 : i32, i32
  }
  func.func @transform_9(%arg0: i32) -> (i32, i32) {
    %c0_i32 = arith.constant 0 : i32
    %c0_i32_0 = arith.constant 0 : i32
    %c0_i32_1 = arith.constant 0 : i32
    return %c0_i32, %c0_i32_0 : i32, i32
  }
  func.func @transform_10(%arg0: i32) -> (i32, i32, i32) {
    %c0_i32 = arith.constant 0 : i32
    %c0_i32_0 = arith.constant 0 : i32
    %c0_i32_1 = arith.constant 0 : i32
    return %arg0, %c0_i32, %c0_i32_0 : i32, i32, i32
  }
}

</mosaic_0001>

<bundles_post_ra>
// kernel: tpu_custom_call.1
= control target key start
LH: loop header
LB: loop body
LE: loop exit
PB: predicated region body
PF: predicated region fallthrough
CT: control target
= control target key end

     0   :  { %15 = vsyncpa [#allocation5], 0  ;;  %s3466_s0 = inlined_call_operand.vmem [shape: s32[2,16,1], index: 0, kind: input, shape index: {}]   ;;  %s3467_s1 = inlined_call_operand.hbm [shape: bf16[128,128], index: 1, kind: input, shape index: {}]   ;;  %s3468_s2 = inlined_call_operand.hbm [shape: bf16[640,128], index: 2, kind: input, shape index: {}]   ;;  %s3469_s3 = inlined_call_operand.hbm [shape: f32[1,128], index: 3, kind: input, shape index: {}]   ;;  %s3470_s4 = inlined_call_operand.hbm [shape: bf16[640,128], index: 4, kind: input, shape index: {}]   ;;  %s3471_s5 = inlined_call_operand.hbm [shape: f32[1,128], index: 5, kind: input, shape index: {}]   ;;  %s3472_s6 = inlined_call_operand.hbm [shape: bf16[640,128], index: 6, kind: input, shape index: {}]   ;;  %s3473_s7 = inlined_call_operand.hbm [shape: f32[1,128], index: 7, kind: input, shape index: {}]   ;;  %s3474_s8 = inlined_call_operand.vmem [shape: bf16[128,128], index: 8, kind: input, shape index: {}]   ;;  %s3475_s9 = inlined_call_operand.vmem [shape: f32[1,128], index: 9, kind: input, shape index: {}]   ;;  %s3476_s10 = inlined_call_operand.hbm [shape: f32[2,16,128], index: 10, kind: output, shape index: {}]  }
   0x1   :  { %16 = vsyncpa [#allocation8], 0 }
   0x2   :  { %17 = vsyncpa [#allocation11], 0 }
   0x3   :  { %18 = vsyncpa [#allocation14], 0 }
   0x4   :  { %19 = vsyncpa [#allocation6], 0  ;;  %s3049_s13 = smov [#allocation7]   ;;  %s3050_s15 = smov [#allocation10]  }
   0x5   :  { %s39_s14 = sshll.u32 %s3049_s13, 4  ;;  %s61_s16 = sshll.u32 %s3050_s15, 4  ;;  %s40_s14 = int_to_ptr.vmem [resolvable:$true] %s39_s14  ;;  %s3120_s16 = int_to_ptr.vmem [resolvable:$true] %s61_s16 }
   0x6   :  { %s2863_s19 = scalar_lea.hbm %s3468_s2, 5120 }
   0x7   :  { %p2864_p0 = scmp.ne.s32.totalorder %s3468_s2, %s2863_s19  ;;  %p2867_p1 = scmp.lt.u32.totalorder %s2863_s19, %s3468_s2 }
   0x9   :  { %p2869_p2 = pnand %p2867_p1, %p2864_p0 }
   0xb   :  { %2872 = shalt.err (!%p2869_p2)
}
   0xc   :  { %s2873_s24 = scalar_lea.vmem %s40_s14, 5120  ;;  %p2878_p4 = scmp.lt.s32.totalorder %s40_s14, %s40_s14 }
   0xd   :  { %p2874_p3 = scmp.ne.s32.totalorder %s40_s14, %s2873_s24  ;;  %p2879_p5 = scmp.lt.s32.totalorder %s2873_s24, %s2873_s24 }
   0xf   :  { %p2880_p6 = por %p2879_p5, %p2878_p4 }
  0x11   :  { %p2881_p7 = pnand %p2880_p6, %p2874_p3 }
  0x13   :  { %2884 = shalt.err (!%p2881_p7)
}
  0x14   :  { %s3051_s25 = smov 64   ;;  %s3052_s26 = smov 4  }
  0x15   :  { %45 = dma.hbm_to_vmem [thread:$0]  %s3468_s2, 5120, %s40_s14, [#allocation8], %s3051_s25, %s3051_s25, %s3052_s26  }
  0x16   :  { %s2885_s11 = scalar_lea.hbm %s3470_s4, 5120 }
  0x17   :  { %p2886_p8 = scmp.ne.s32.totalorder %s3470_s4, %s2885_s11  ;;  %p2889_p9 = scmp.lt.u32.totalorder %s2885_s11, %s3470_s4 }
  0x19   :  { %p2891_p10 = pnand %p2889_p9, %p2886_p8 }
  0x1b   :  { %2894 = shalt.err (!%p2891_p10)
}
  0x1c   :  { %s2895_s18 = scalar_lea.vmem %s3120_s16, 5120  ;;  %p2900_p12 = scmp.lt.s32.totalorder %s3120_s16, %s3120_s16 }
  0x1d   :  { %p2896_p11 = scmp.ne.s32.totalorder %s3120_s16, %s2895_s18  ;;  %p2901_p13 = scmp.lt.s32.totalorder %s2895_s18, %s2895_s18 }
  0x1f   :  { %p2902_p0 = por %p2901_p13, %p2900_p12 }
  0x21   :  { %p2903_p1 = pnand %p2902_p0, %p2896_p11 }
  0x23   :  { %2906 = shalt.err (!%p2903_p1)
}
  0x24   :  { %67 = dma.hbm_to_vmem [thread:$0]  %s3470_s4, 5120, %s3120_s16, [#allocation11], %s3051_s25, %s3051_s25, %s3052_s26  }
  0x25   :  { %s3053_s19 = smov [#allocation13]   ;;  %s3054_s21 = smov [#allocation4]  }
  0x26   :  { %s83_s20 = sshll.u32 %s3053_s19, 4  ;;  %s27_s22 = sshll.u32 %s3054_s21, 4  ;;  %s84_s20 = int_to_ptr.vmem [resolvable:$true] %s83_s20  ;;  %s3157_s22 = int_to_ptr.vmem [resolvable:$true] %s27_s22 }
  0x27   :  { %s2907_s27 = scalar_lea.hbm %s3472_s6, 5120 }
  0x28   :  { %p2908_p2 = scmp.ne.s32.totalorder %s3472_s6, %s2907_s27  ;;  %p2911_p3 = scmp.lt.u32.totalorder %s2907_s27, %s3472_s6 }
  0x2a   :  { %p2913_p4 = pnand %p2911_p3, %p2908_p2 }
  0x2c   :  { %2916 = shalt.err (!%p2913_p4)
}
  0x2d   :  { %s2917_s4 = scalar_lea.vmem %s84_s20, 5120  ;;  %p2922_p6 = scmp.lt.s32.totalorder %s84_s20, %s84_s20 }
  0x2e   :  { %p2918_p5 = scmp.ne.s32.totalorder %s84_s20, %s2917_s4  ;;  %p2923_p7 = scmp.lt.s32.totalorder %s2917_s4, %s2917_s4 }
  0x30   :  { %p2924_p8 = por %p2923_p7, %p2922_p6 }
  0x32   :  { %p2925_p9 = pnand %p2924_p8, %p2918_p5 }
  0x34   :  { %2928 = shalt.err (!%p2925_p9)
}
  0x35   :  { %89 = dma.hbm_to_vmem [thread:$0]  %s3472_s6, 5120, %s84_s20, [#allocation14], %s3051_s25, %s3051_s25, %s3052_s26  }
  0x36   :  { %s2929_s17 = scalar_lea.hbm %s3467_s1, 1024 }
  0x37   :  { %p2930_p10 = scmp.ne.s32.totalorder %s3467_s1, %s2929_s17  ;;  %p2933_p11 = scmp.lt.u32.totalorder %s2929_s17, %s3467_s1 }
  0x39   :  { %p2935_p12 = pnand %p2933_p11, %p2930_p10 }
  0x3b   :  { %2938 = shalt.err (!%p2935_p12)
}
  0x3c   :  { %s2939_s21 = scalar_lea.vmem %s3157_s22, 1024  ;;  %p2944_p0 = scmp.lt.s32.totalorder %s3157_s22, %s3157_s22 }
  0x3d   :  { %p2940_p13 = scmp.ne.s32.totalorder %s3157_s22, %s2939_s21  ;;  %p2945_p1 = scmp.lt.s32.totalorder %s2939_s21, %s2939_s21 }
  0x3f   :  { %p2946_p2 = por %p2945_p1, %p2944_p0 }
  0x41   :  { %p2947_p3 = pnand %p2946_p2, %p2940_p13 }
  0x43   :  { %2950 = shalt.err (!%p2947_p3)
}
  0x44   :  { %33 = dma.hbm_to_vmem [thread:$0]  %s3467_s1, 1024, %s3157_s22, [#allocation5], %s3051_s25, %s3051_s25, %s3052_s26  }
  0x45   :  { %s3055_s23 = smov [#allocation9]   ;;  %s3056_s27 = smov [#allocation12]  }
  0x46   :  { %s52_s24 = sshll.u32 %s3055_s23, 4  ;;  %s74_s28 = sshll.u32 %s3056_s27, 4  ;;  %s53_s24 = int_to_ptr.vmem [resolvable:$true] %s52_s24  ;;  %s75_s28 = int_to_ptr.vmem [resolvable:$true] %s74_s28 }
  0x47   :  { %s2951_s11 = scalar_lea.hbm %s3469_s3, 16 }
  0x48   :  { %p2952_p4 = scmp.ne.s32.totalorder %s3469_s3, %s2951_s11  ;;  %p2955_p5 = scmp.lt.u32.totalorder %s2951_s11, %s3469_s3 }
  0x4a   :  { %p2957_p6 = pnand %p2955_p5, %p2952_p4 }
  0x4c   :  { %2960 = shalt.err (!%p2957_p6)
}
  0x4d   :  { %s2961_s1 = scalar_lea.vmem %s53_s24, 16  ;;  %s2965_s25 = scalar_lea.vmem %s53_s24, 32 }
  0x4e   :  { %p2962_p7 = scmp.ne.s32.totalorder %s53_s24, %s2961_s1  ;;  %p2966_p8 = scmp.lt.s32.totalorder %s53_s24, %s53_s24 }
  0x4f   :  { %p2967_p9 = scmp.lt.s32.totalorder %s2965_s25, %s2961_s1 }
  0x51   :  { %p2968_p10 = por %p2967_p9, %p2966_p8 }
  0x53   :  { %p2969_p11 = pnand %p2968_p10, %p2962_p7 }
  0x55   :  { %2972 = shalt.err (!%p2969_p11)
}
  0x56   :  { %55 = dma.hbm_to_vmem [thread:$0]  %s3469_s3, 16, %s53_s24, [#allocation8]  }
  0x57   :  { %s2973_s18 = scalar_lea.hbm %s3471_s5, 16 }
  0x58   :  { %p2974_p12 = scmp.ne.s32.totalorder %s3471_s5, %s2973_s18  ;;  %p2977_p13 = scmp.lt.u32.totalorder %s2973_s18, %s3471_s5 }
  0x5a   :  { %p2979_p0 = pnand %p2977_p13, %p2974_p12 }
  0x5c   :  { %2982 = shalt.err (!%p2979_p0)
}
  0x5d   :  { %s2983_s6 = scalar_lea.vmem %s75_s28, 16  ;;  %s2987_s20 = scalar_lea.vmem %s75_s28, 32 }
  0x5e   :  { %p2984_p1 = scmp.ne.s32.totalorder %s75_s28, %s2983_s6  ;;  %p2988_p2 = scmp.lt.s32.totalorder %s75_s28, %s75_s28 }
  0x5f   :  { %p2989_p3 = scmp.lt.s32.totalorder %s2987_s20, %s2983_s6 }
  0x61   :  { %p2990_p4 = por %p2989_p3, %p2988_p2 }
  0x63   :  { %p2991_p5 = pnand %p2990_p4, %p2984_p1 }
  0x65   :  { %2994 = shalt.err (!%p2991_p5)
}
  0x66   :  { %77 = dma.hbm_to_vmem [thread:$0]  %s3471_s5, 16, %s75_s28, [#allocation11]  }
  0x67   :  { %s3057_s24 = smov [#allocation15]   ;;  %s2995_s11 = scalar_lea.hbm %s3473_s7, 16 }
  0x68   :  { %s96_s27 = sshll.u32 %s3057_s24, 4  ;;  %p2996_p6 = scmp.ne.s32.totalorder %s3473_s7, %s2995_s11  ;;  %s97_s27 = int_to_ptr.vmem [resolvable:$true] %s96_s27 }
  0x69   :  { %p2999_p7 = scmp.lt.u32.totalorder %s2995_s11, %s3473_s7 }
  0x6b   :  { %p3001_p8 = pnand %p2999_p7, %p2996_p6 }
  0x6d   :  { %3004 = shalt.err (!%p3001_p8)
}
  0x6e   :  { %s3005_s1 = scalar_lea.vmem %s97_s27, 16  ;;  %s3009_s5 = scalar_lea.vmem %s97_s27, 32 }
  0x6f   :  { %p3006_p9 = scmp.ne.s32.totalorder %s97_s27, %s3005_s1  ;;  %p3010_p10 = scmp.lt.s32.totalorder %s97_s27, %s97_s27 }
  0x70   :  { %p3011_p11 = scmp.lt.s32.totalorder %s3009_s5, %s3005_s1 }
  0x72   :  { %p3012_p12 = por %p3011_p11, %p3010_p10 }
  0x74   :  { %p3013_p13 = pnand %p3012_p12, %p3006_p9 }
  0x76   :  { %3016 = shalt.err (!%p3013_p13)
}
  0x77   :  { %99 = dma.hbm_to_vmem [thread:$0]  %s3473_s7, 16, %s97_s27, [#allocation14]  }
  0x78   :  { %3039 = dma.done.wait [#allocation5], 1024  }
  0x79   :  { %3040 = vsyncadd [#allocation5], 4294966272 }
  0x7a   :  { %3041 = dma.done.wait [#allocation8], 5136  }
  0x7b   :  { %3042 = vsyncadd [#allocation8], 4294962160 }
  0x7c   :  { %3043 = dma.done.wait [#allocation11], 5136  }
  0x7d   :  { %3044 = vsyncadd [#allocation11], 4294962160 }
  0x7e   :  { %3045 = dma.done.wait [#allocation14], 5136  }
  0x7f   :  { %3046 = vsyncadd [#allocation14], 4294962160  ;;  %v3058_v0 = vmov 0   ;;  %v3059_v1 = vmov 0.0   ;;  %v131_v2 = vld [vmem:[%s3466_s0] sm:$0xff]  ;;  %v132_v3 = vld [vmem:[%s3466_s0 + $0x8] sm:$0xff]  ;;  %v129_v24 = vlaneseq }
  0x80   :  { %2717 = vset.pattern.permute.xlu0 %v3058_v0  ;;  %2718 = vset.pattern.permute.xlu1 %v3058_v0  ;;  %v2211_v4 = vld [vmem:[%s3466_s0 + $0x10] sm:$0xff]  ;;  %v2212_v5 = vld [vmem:[%s3466_s0 + $0x18] sm:$0xff]  ;;  %v2719_v6 = vld [vmem:[#allocation4] sm:$0xff]   ;;  %vm3060_vm0 = vmmov 0   ;;  %v3061_v34 = vmov 1.0|1.0  }
  0x81   :  { %2581 = vmatprep.subr.bf16.mxu0 %v3059_v1  ;;  %2601 = vmatprep.subr.bf16.mxu1 %v3059_v1  ;;  %v2720_v7 = vld [vmem:[#allocation4 + $0x8] sm:$0xff]   ;;  %v2722_v8 = vld [vmem:[#allocation4] sm:$0xff]   ;;  %v2721_v10 = vld [vmem:[#allocation4 + $0x10] sm:$0xff]   ;;  %v130_v27 = vand.u32 127, %v129_v24  ;;  %v3262_v62 = vshrl.u32 %v129_v24, 7  ;;  %v3265_v63 = vrot.slane %v3059_v1, 7 }
  0x82   :  { %134 = vperm.xlu0 %2717, %v131_v2   ;;  %256 = vperm.xlu1 %2718, %v2211_v4   ;;  %v2724_v9 = vld [vmem:[#allocation4 + $0x8] sm:$0xff]   ;;  %v2726_v11 = vld [vmem:[#allocation4 + $0x10] sm:$0xff]   ;;  %v2723_v12 = vld [vmem:[#allocation4 + $0x18] sm:$0xff]   ;;  %v3268_v0 = vrot.slane %v3059_v1, 1  ;;  %v3271_v2 = vrot.slane %v3059_v1, 6  ;;  %s3062_s5 = smov [#allocation16]  }
  0x83   :  { %2582 = vmatpush3.bf16.msra.mxu0 %v2719_v6  ;;  %2597 = vmatprep.mubr.msk.bf16.mxu0 %vm3060_vm0, %v3059_v1  ;;  %v2725_v13 = vld [vmem:[#allocation4 + $0x20] sm:$0xff]   ;;  %v2728_v14 = vld [vmem:[#allocation4 + $0x18] sm:$0xff]   ;;  %v2727_v16 = vld [vmem:[#allocation4 + $0x28] sm:$0xff]   ;;  %vm382_vm7 = vcmp.lt.s32.totalorder %v3262_v62, 2  ;;  %vm390_vm8 = vcmp.lt.s32.totalorder %v3262_v62, 1  ;;  %vm400_vm9 = vcmp.lt.s32.totalorder %v3262_v62, 7 }
  0x84   :  { %2583 = vmatprep.subr.bf16.mxu0 %v3059_v1  ;;  %2602 = vmatpush3.bf16.msra.mxu1 %v2722_v8  ;;  %v2730_v15 = vld [vmem:[#allocation4 + $0x20] sm:$0xff]   ;;  %v2732_v17 = vld [vmem:[#allocation4 + $0x28] sm:$0xff]   ;;  %v2729_v18 = vld [vmem:[#allocation4 + $0x30] sm:$0xff]   ;;  %vm408_vm10 = vcmp.lt.s32.totalorder %v3262_v62, 6  ;;  %s2186_s28 = sshll.u32 %s3062_s5, 4  ;;  %s2187_s28 = int_to_ptr.vmem [resolvable:$true] %s2186_s28 }
  0x85   :  { %2617 = vmatprep.mubr.msk.bf16.mxu1 %vm3060_vm0, %v3059_v1  ;;  %2603 = vmatprep.subr.bf16.mxu1 %v3059_v1  ;;  %v2733_v19 = vld [vmem:[#allocation4 + $0x30] sm:$0xff]   ;;  %v2731_v20 = vld [vmem:[#allocation4 + $0x38] sm:$0xff]   ;;  %v2735_v21 = vld [vmem:[#allocation7 + $0x40] sm:$0xff]   ;;  %s3017_s25 = scalar_lea.vmem %s2187_s28, 512  ;;  %p3022_p1 = scmp.lt.s32.totalorder %s2187_s28, %s2187_s28 }
  0x86   :  { %137 = vperm.xlu0 %2717, %v132_v3   ;;  %259 = vperm.xlu1 %2718, %v2212_v5   ;;  %v2734_v22 = vld [vmem:[#allocation4 + $0x38] sm:$0xff]   ;;  %v2737_v23 = vld [vmem:[#allocation7 + $0xc0] sm:$0xff]   ;;  %v2739_v32 = vld [vmem:[#allocation7 + $0x48] sm:$0xff]   ;;  %p3018_p0 = scmp.ne.s32.totalorder %s2187_s28, %s3017_s25  ;;  %p3023_p2 = scmp.lt.s32.totalorder %s3017_s25, %s3017_s25 }
  0x87   :  { %2584 = vmatpush3.bf16.msra.mxu0 %v2720_v7  ;;  %v2736_v30 = vld [vmem:[#allocation7] sm:$0xff]   ;;  %v2741_v33 = vld [vmem:[#allocation7 + $0xc8] sm:$0xff]   ;;  %v2743_v37 = vld [vmem:[#allocation7 + $0x50] sm:$0xff]  }
  0x88   :  { %2585 = vmatprep.subr.bf16.mxu0 %v3059_v1  ;;  %2604 = vmatpush3.bf16.msra.mxu1 %v2724_v9  ;;  %v2738_v31 = vld [vmem:[#allocation7 + $0x80] sm:$0xff]   ;;  %v2740_v35 = vld [vmem:[#allocation7 + $0x8] sm:$0xff]   ;;  %v2745_v38 = vld [vmem:[#allocation7 + $0xd0] sm:$0xff]   ;;  %p3024_p3 = por %p3023_p2, %p3022_p1 }
  0x89   :  { %2605 = vmatprep.subr.bf16.mxu1 %v3059_v1  ;;  %v2742_v36 = vld [vmem:[#allocation7 + $0x88] sm:$0xff]   ;;  %v2744_v39 = vld [vmem:[#allocation7 + $0x10] sm:$0xff]   ;;  %v2747_v41 = vld [vmem:[#allocation7 + $0x58] sm:$0xff]  }
  0x8a   :  { %v2746_v40 = vld [vmem:[#allocation7 + $0x90] sm:$0xff]   ;;  %v2749_v42 = vld [vmem:[#allocation7 + $0xd8] sm:$0xff]   ;;  %v2751_v45 = vld [vmem:[#allocation7 + $0x60] sm:$0xff]   ;;  %p3025_p4 = pnand %p3024_p3, %p3018_p0 }
  0x8b   :  { %2586 = vmatpush3.bf16.msra.mxu0 %v2721_v10  ;;  %v2748_v43 = vld [vmem:[#allocation7 + $0x18] sm:$0xff]   ;;  %v2753_v46 = vld [vmem:[#allocation7 + $0xe0] sm:$0xff]   ;;  %v2755_v49 = vld [vmem:[#allocation7 + $0x68] sm:$0xff]  }
  0x8c   :  { %2587 = vmatprep.subr.bf16.mxu0 %v3059_v1  ;;  %2606 = vmatpush3.bf16.msra.mxu1 %v2726_v11  ;;  %v2750_v44 = vld [vmem:[#allocation7 + $0x98] sm:$0xff]   ;;  %v2752_v47 = vld [vmem:[#allocation7 + $0x20] sm:$0xff]   ;;  %v2757_v50 = vld [vmem:[#allocation7 + $0xe8] sm:$0xff]  }
  0x8d   :  { %2607 = vmatprep.subr.bf16.mxu1 %v3059_v1  ;;  %v2754_v48 = vld [vmem:[#allocation7 + $0xa0] sm:$0xff]   ;;  %v2756_v51 = vld [vmem:[#allocation7 + $0x28] sm:$0xff]   ;;  %v2759_v53 = vld [vmem:[#allocation7 + $0x70] sm:$0xff]  }
  0x8e   :  { %v2758_v52 = vld [vmem:[#allocation7 + $0xa8] sm:$0xff]   ;;  %v2761_v54 = vld [vmem:[#allocation7 + $0xf0] sm:$0xff]   ;;  %v2763_v57 = vld [vmem:[#allocation7 + $0x78] sm:$0xff]  }
  0x8f   :  { %2588 = vmatpush3.bf16.msra.mxu0 %v2723_v12  ;;  %v2760_v55 = vld [vmem:[#allocation7 + $0x30] sm:$0xff]   ;;  %v2764_v58 = vld [vmem:[#allocation7 + $0x38] sm:$0xff]   ;;  %v2767_v61 = vld [vmem:[#allocation7 + $0x100] sm:$0xff]  }
  0x90   :  { %2589 = vmatprep.subr.bf16.mxu0 %v3059_v1  ;;  %2608 = vmatpush3.bf16.msra.mxu1 %v2728_v14  ;;  %v2762_v56 = vld [vmem:[#allocation7 + $0xb0] sm:$0xff]   ;;  %v2765_v59 = vld [vmem:[#allocation7 + $0xf8] sm:$0xff]  }
  0x91   :  { %2609 = vmatprep.subr.bf16.mxu1 %v3059_v1  ;;  %v2766_v60 = vld [vmem:[#allocation7 + $0xb8] sm:$0xff]   ;;  %v2857_v62 = vld [vmem:[%s3474_s8 + $0x10] sm:$0xff]  }
  0x93   :  { %2590 = vmatpush3.bf16.msra.mxu0 %v2725_v13 }
  0x94   :  { %2591 = vmatprep.subr.bf16.mxu0 %v3059_v1  ;;  %2610 = vmatpush3.bf16.msra.mxu1 %v2730_v15 }
  0x95   :  { %2611 = vmatprep.subr.bf16.mxu1 %v3059_v1 }
  0x97   :  { %2592 = vmatpush3.bf16.msra.mxu0 %v2727_v16 }
  0x98   :  { %2593 = vmatprep.subr.bf16.mxu0 %v3059_v1  ;;  %2612 = vmatpush3.bf16.msra.mxu1 %v2732_v17 }
  0x99   :  { %2613 = vmatprep.subr.bf16.mxu1 %v3059_v1 }
  0x9b   :  { %2594 = vmatpush3.bf16.msra.mxu0 %v2729_v18 }
  0x9c   :  { %2595 = vmatprep.subr.bf16.mxu0 %v3059_v1  ;;  %2614 = vmatpush3.bf16.msra.mxu1 %v2733_v19 }
  0x9d   :  { %2615 = vmatprep.subr.bf16.mxu1 %v3059_v1 }
  0x9f   :  { %2596 = vmatpush3.bf16.msra.mxu0 %v2731_v20 }
  0xa0   :  { %2373 = vmatprep.subr.bf16.mxu0 %v2735_v21  ;;  %2616 = vmatpush3.bf16.msra.mxu1 %v2734_v22 }
  0xa1   :  { %2401 = vmatprep.subr.bf16.mxu1 %v2737_v23 }
 0x101   :  { %v135_v25 = vpop.permute.xlu0 %134  ;;  %v257_v26 = vpop.permute.xlu1 %256 }
 0x102   :  { %vm261_vm1 = vcmp.eq.s32.totalorder %v257_v26, %v130_v27  ;;  %vm139_vm2 = vcmp.eq.s32.totalorder %v135_v25, %v130_v27  ;;  %v2768_v26 = vld [vmem:[#allocation7 + $0x108] sm:$0xff]  }
 0x105   :  { %v138_v28 = vpop.permute.xlu0 %137  ;;  %v260_v29 = vpop.permute.xlu1 %259 }
 0x106   :  { %vm140_vm3 = vcmp.eq.s32.totalorder %v138_v28, %v130_v27  ;;  %vm262_vm4 = vcmp.eq.s32.totalorder %v260_v29, %v130_v27 }
 0x107   :  { %vm2209_vm5 = vmpackc.low %vm140_vm3, %vm139_vm2 }
 0x108   :  { %2598 = vmatmul.mubr.msk.bf16.vlgmr.msra.gmra.mrb[0].mxu0 %vm2209_vm5, %v3061_v34  ;;  %vm2221_vm6 = vmpackc.low %vm262_vm4, %vm261_vm1 }
 0x109   :  { %2618 = vmatmul.mubr.msk.bf16.vlgmr.msra.gmra.mrb[0].mxu1 %vm2221_vm6, %v3061_v34  ;;  %2374 = vmatpush3.bf16.msra.mxu0 %v2736_v30 }
 0x10a   :  { %2402 = vmatpush3.bf16.msra.mxu1 %v2738_v31  ;;  %2375 = vmatprep.subr.bf16.mxu0 %v2739_v32  ;;  %v3305_v31 = vrot.slane %v3059_v1, 2 }
 0x10b   :  { %2403 = vmatprep.subr.bf16.mxu1 %v2741_v33 }
 0x10d   :  { %2376 = vmatpush3.bf16.msra.mxu0 %v2740_v35 }
 0x10e   :  { %2404 = vmatpush3.bf16.msra.mxu1 %v2742_v36  ;;  %2377 = vmatprep.subr.bf16.mxu0 %v2743_v37  ;;  %v2769_v36 = vld [vmem:[#allocation7 + $0x110] sm:$0xff]  }
 0x10f   :  { %2405 = vmatprep.subr.bf16.mxu1 %v2745_v38 }
 0x111   :  { %2378 = vmatpush3.bf16.msra.mxu0 %v2744_v39 }
 0x112   :  { %2406 = vmatpush3.bf16.msra.mxu1 %v2746_v40  ;;  %2379 = vmatprep.subr.bf16.mxu0 %v2747_v41  ;;  %v2770_v40 = vld [vmem:[#allocation7 + $0x118] sm:$0xff]  }
 0x113   :  { %2407 = vmatprep.subr.bf16.mxu1 %v2749_v42  ;;  %v2771_v42 = vld [vmem:[#allocation7 + $0x120] sm:$0xff]  }
 0x115   :  { %2380 = vmatpush3.bf16.msra.mxu0 %v2748_v43  ;;  %v2772_v43 = vld [vmem:[#allocation7 + $0x128] sm:$0xff]  }
 0x116   :  { %2408 = vmatpush3.bf16.msra.mxu1 %v2750_v44  ;;  %2381 = vmatprep.subr.bf16.mxu0 %v2751_v45  ;;  %v2773_v44 = vld [vmem:[#allocation7 + $0x130] sm:$0xff]   ;;  %v2774_v45 = vld [vmem:[#allocation7 + $0x138] sm:$0xff]  }
 0x117   :  { %2409 = vmatprep.subr.bf16.mxu1 %v2753_v46 }
 0x119   :  { %2382 = vmatpush3.bf16.msra.mxu0 %v2752_v47 }
 0x11a   :  { %2410 = vmatpush3.bf16.msra.mxu1 %v2754_v48  ;;  %2383 = vmatprep.subr.bf16.mxu0 %v2755_v49  ;;  %v2775_v49 = vld [vmem:[#allocation10 + $0x40] sm:$0xff]  }
 0x11b   :  { %2411 = vmatprep.subr.bf16.mxu1 %v2757_v50  ;;  %v2776_v50 = vld [vmem:[#allocation10] sm:$0xff]  }
 0x11d   :  { %2384 = vmatpush3.bf16.msra.mxu0 %v2756_v51  ;;  %v2777_v51 = vld [vmem:[#allocation10 + $0xc0] sm:$0xff]  }
 0x11e   :  { %2412 = vmatpush3.bf16.msra.mxu1 %v2758_v52  ;;  %2385 = vmatprep.subr.bf16.mxu0 %v2759_v53  ;;  %v2778_v52 = vld [vmem:[#allocation10 + $0x80] sm:$0xff]   ;;  %v2779_v53 = vld [vmem:[#allocation10 + $0x48] sm:$0xff]  }
 0x11f   :  { %2413 = vmatprep.subr.bf16.mxu1 %v2761_v54  ;;  %v2780_v54 = vld [vmem:[#allocation10 + $0x8] sm:$0xff]  }
 0x121   :  { %2386 = vmatpush3.bf16.msra.mxu0 %v2760_v55  ;;  %v2781_v55 = vld [vmem:[#allocation10 + $0xc8] sm:$0xff]  }
 0x122   :  { %2414 = vmatpush3.bf16.msra.mxu1 %v2762_v56  ;;  %2387 = vmatprep.subr.bf16.mxu0 %v2763_v57  ;;  %v2782_v56 = vld [vmem:[#allocation10 + $0x88] sm:$0xff]   ;;  %v2783_v57 = vld [vmem:[#allocation10 + $0x50] sm:$0xff]  }
 0x123   :  { %2415 = vmatprep.subr.bf16.mxu1 %v2765_v59  ;;  %v2784_v59 = vld [vmem:[#allocation10 + $0x10] sm:$0xff]  }
 0x125   :  { %2388 = vmatpush3.bf16.msra.mxu0 %v2764_v58  ;;  %v2785_v58 = vld [vmem:[#allocation10 + $0xd0] sm:$0xff]  }
 0x126   :  { %2416 = vmatpush3.bf16.msra.mxu1 %v2766_v60  ;;  %2621 = vmatprep.subr.bf16.mxu0 %v2767_v61  ;;  %v2786_v60 = vld [vmem:[#allocation10 + $0x90] sm:$0xff]  }
 0x127   :  { %2439 = vmatprep.subr.bf16.mxu1 %v2775_v49 }
 0x1db   :  { %v242_v3 = vpop.f32.mrb[0].mxu0 }
 0x1dc   :  { %v377_v4 = vrot.slane %v242_v3, 6  ;;  %v387_v5 = vrot.slane %v242_v3, 7  ;;  %v397_v6 = vrot.slane %v242_v3, 1  ;;  %v2599_v7 = vpop.f32.mrb[1].mxu0  ;;  %v3276_v8 = vpop.f32.mrb[0].mxu1  ;;  %v395_v25 = vpack.c.bf16 %v3059_v1, %v242_v3 }
 0x1dd   :  { %v245_v9 = vpop.f32.mrb[2].mxu0  ;;  %v423_v10 = vrot.slane %v3276_v8, 7  ;;  %v432_v11 = vrot.slane %v3276_v8, 1  ;;  %v2619_v12 = vpop.f32.mrb[1].mxu1  ;;  %v416_v22 = vrot.slane %v3276_v8, 6  ;;  %v405_v30 = vrot.slane %v242_v3, 2 }
 0x1de   :  { %v2600_v13 = vpop.f32.mrb[3].mxu0  ;;  %v391_v14 = vsel %vm390_vm8, %v387_v5, %v3265_v63  ;;  %v392_v15 = vsel %vm390_vm8, %v3265_v63, %v387_v5  ;;  %v402_v16 = vsel %vm400_vm9, %v397_v6, %v3268_v0  ;;  %v383_v17 = vsel %vm382_vm7, %v377_v4, %v3271_v2  ;;  %v367_v18 = vpop.f32.mrb[2].mxu1  ;;  %v2789_v3 = vld [vmem:[#allocation10 + $0xd8] sm:$0xff]   ;;  %v2791_v6 = vld [vmem:[#allocation10 + $0x60] sm:$0xff]   ;;  %v2797_v12 = vld [vmem:[#allocation10 + $0xe8] sm:$0xff]  }
 0x1df   :  { %v393_v19 = vpack.c.bf16 %v391_v14, %v392_v15  ;;  %v403_v20 = vpack.c.bf16 %v3268_v0, %v402_v16  ;;  %v384_v21 = vsel %vm382_vm7, %v3271_v2, %v377_v4  ;;  %v2620_v23 = vpop.f32.mrb[3].mxu1  ;;  %v426_v27 = vsel %vm390_vm8, %v423_v10, %v3265_v63  ;;  %v2788_v4 = vld [vmem:[#allocation10 + $0x18] sm:$0xff]   ;;  %v2793_v7 = vld [vmem:[#allocation10 + $0xe0] sm:$0xff]   ;;  %v2798_v13 = vld [vmem:[#allocation10 + $0xa8] sm:$0xff]  }
 0x1e0   :  { %v385_v24 = vpack.c.bf16 %v383_v17, %v384_v21  ;;  %v427_v28 = vsel %vm390_vm8, %v3265_v63, %v423_v10  ;;  %v436_v32 = vsel %vm400_vm9, %v432_v11, %v3268_v0  ;;  %v419_v33 = vsel %vm382_vm7, %v416_v22, %v3271_v2  ;;  %v2790_v5 = vld [vmem:[#allocation10 + $0x98] sm:$0xff]   ;;  %v2794_v9 = vld [vmem:[#allocation10 + $0xa0] sm:$0xff]   ;;  %v2795_v10 = vld [vmem:[#allocation10 + $0x68] sm:$0xff]  }
 0x1e1   :  { %815 = vmatprep.mubr.bf16.mxu0 %v393_v19  ;;  %864 = vmatprep.mubr.bf16.mxu1 %v403_v20  ;;  %v428_v29 = vpack.c.bf16 %v426_v27, %v427_v28  ;;  %v420_v34 = vsel %vm382_vm7, %v3271_v2, %v416_v22  ;;  %v437_v35 = vpack.c.bf16 %v3268_v0, %v436_v32  ;;  %v439_v46 = vrot.slane %v3276_v8, 2  ;;  %v2796_v11 = vld [vmem:[#allocation10 + $0x28] sm:$0xff]   ;;  %v2799_v14 = vld [vmem:[#allocation10 + $0x70] sm:$0xff]   ;;  %v2803_v18 = vld [vmem:[#allocation10 + $0x78] sm:$0xff]  }
 0x1e2   :  { %816 = vmatmul.mubr.bf16.vlgmr.msra.gmra.mrb[4].mxu0 %v385_v24  ;;  %865 = vmatmul.mubr.bf16.vlgmr.msra.gmra.mrb[4].mxu1 %v395_v25  ;;  %v421_v37 = vpack.c.bf16 %v419_v33, %v420_v34  ;;  %v410_v38 = vsel %vm408_vm10, %v405_v30, %v3305_v31  ;;  %v430_v39 = vpack.c.bf16 %v3059_v1, %v3276_v8  ;;  %v2792_v8 = vld [vmem:[#allocation10 + $0x20] sm:$0xff]   ;;  %v2800_v15 = vld [vmem:[#allocation10 + $0x30] sm:$0xff]   ;;  %v2804_v19 = vld [vmem:[#allocation10 + $0x38] sm:$0xff]  }
 0x1e3   :  { %2622 = vmatpush3.bf16.msra.mxu0 %v2767_v61  ;;  %823 = vmatprep.mubr.bf16.mxu0 %v428_v29  ;;  %v411_v41 = vpack.c.bf16 %v3305_v31, %v410_v38  ;;  %v443_v47 = vsel %vm408_vm10, %v439_v46, %v3305_v31  ;;  %v2787_v61 = vld [vmem:[#allocation10 + $0x58] sm:$0xff]   ;;  %v2801_v16 = vld [vmem:[#allocation10 + $0xf0] sm:$0xff]   ;;  %v2807_v22 = vld [vmem:[#allocation10 + $0x100] sm:$0xff]  }
 0x1e4   :  { %2623 = vmatprep.subr.bf16.mxu0 %v2768_v26  ;;  %872 = vmatprep.mubr.bf16.mxu1 %v437_v35  ;;  %v444_v48 = vpack.c.bf16 %v3305_v31, %v443_v47  ;;  %v2802_v17 = vld [vmem:[#allocation10 + $0xb0] sm:$0xff]   ;;  %v2805_v20 = vld [vmem:[#allocation10 + $0xf8] sm:$0xff]  }
 0x1e5   :  { %2440 = vmatpush3.bf16.msra.mxu1 %v2776_v50  ;;  %v2806_v21 = vld [vmem:[#allocation10 + $0xb8] sm:$0xff]  }
 0x1e6   :  { %2441 = vmatprep.subr.bf16.mxu1 %v2779_v53  ;;  %v2223_v25 = vld [vmem:[#allocation9] ss:$0 sm:$0xff] }
 0x1e7   :  { %2624 = vmatpush3.bf16.msra.mxu0 %v2768_v26 }
 0x1e8   :  { %2625 = vmatprep.subr.bf16.mxu0 %v2769_v36 }
 0x1e9   :  { %2442 = vmatpush3.bf16.msra.mxu1 %v2780_v54 }
 0x1ea   :  { %824 = vmatmul.mubr.bf16.gmra.mrb[8].mxu0 %v421_v37  ;;  %873 = vmatmul.mubr.bf16.gmra.mrb[8].mxu1 %v430_v39 }
 0x1eb   :  { %2626 = vmatpush3.bf16.msra.mxu0 %v2769_v36  ;;  %2637 = vmatprep.mubr.bf16.mxu0 %v411_v41 }
 0x1ec   :  { %2627 = vmatprep.subr.bf16.mxu0 %v2770_v40  ;;  %2443 = vmatprep.subr.bf16.mxu1 %v2783_v57 }
 0x1ed   :  { %2444 = vmatpush3.bf16.msra.mxu1 %v2784_v59 }
 0x1ee   :  { %2445 = vmatprep.subr.bf16.mxu1 %v2787_v61 }
 0x1ef   :  { %2628 = vmatpush3.bf16.msra.mxu0 %v2770_v40 }
 0x1f0   :  { %2629 = vmatprep.subr.bf16.mxu0 %v2771_v42 }
 0x1f1   :  { %2446 = vmatpush3.bf16.msra.mxu1 %v2788_v4 }
 0x1f2   :  { %2447 = vmatprep.subr.bf16.mxu1 %v2791_v6 }
 0x1f3   :  { %2630 = vmatpush3.bf16.msra.mxu0 %v2771_v42 }
 0x1f4   :  { %2631 = vmatprep.subr.bf16.mxu0 %v2772_v43 }
 0x1f5   :  { %2448 = vmatpush3.bf16.msra.mxu1 %v2792_v8 }
 0x1f6   :  { %2449 = vmatprep.subr.bf16.mxu1 %v2795_v10 }
 0x1f7   :  { %2632 = vmatpush3.bf16.msra.mxu0 %v2772_v43 }
 0x1f8   :  { %2633 = vmatprep.subr.bf16.mxu0 %v2773_v44 }
 0x1f9   :  { %2450 = vmatpush3.bf16.msra.mxu1 %v2796_v11 }
 0x1fa   :  { %2451 = vmatprep.subr.bf16.mxu1 %v2799_v14 }
 0x1fb   :  { %2634 = vmatpush3.bf16.msra.mxu0 %v2773_v44 }
 0x1fc   :  { %2635 = vmatprep.subr.bf16.mxu0 %v2774_v45 }
 0x1fd   :  { %2452 = vmatpush3.bf16.msra.mxu1 %v2800_v15  ;;  %v2808_v15 = vld [vmem:[#allocation10 + $0x108] sm:$0xff]  }
 0x1fe   :  { %2453 = vmatprep.subr.bf16.mxu1 %v2803_v18 }
 0x1ff   :  { %2636 = vmatpush3.bf16.msra.mxu0 %v2774_v45 }
 0x200   :  { %2467 = vmatprep.subr.bf16.mxu0 %v2777_v51 }
 0x201   :  { %2454 = vmatpush3.bf16.msra.mxu1 %v2804_v19 }
 0x202   :  { %2638 = vmatmul.mubr.bf16.vlgmr.msra.gmra.mrb[12].mxu0 %v444_v48  ;;  %2641 = vmatprep.subr.bf16.mxu1 %v2807_v22 }
 0x203   :  { %2468 = vmatpush3.bf16.msra.mxu0 %v2778_v52 }
 0x204   :  { %2469 = vmatprep.subr.bf16.mxu0 %v2781_v55 }
 0x207   :  { %2470 = vmatpush3.bf16.msra.mxu0 %v2782_v56 }
 0x208   :  { %2471 = vmatprep.subr.bf16.mxu0 %v2785_v58 }
 0x20b   :  { %2472 = vmatpush3.bf16.msra.mxu0 %v2786_v60 }
 0x20c   :  { %2473 = vmatprep.subr.bf16.mxu0 %v2789_v3 }
 0x20f   :  { %2474 = vmatpush3.bf16.msra.mxu0 %v2790_v5 }
 0x210   :  { %2475 = vmatprep.subr.bf16.mxu0 %v2793_v7 }
 0x213   :  { %2476 = vmatpush3.bf16.msra.mxu0 %v2794_v9 }
 0x214   :  { %2477 = vmatprep.subr.bf16.mxu0 %v2797_v12 }
 0x217   :  { %2478 = vmatpush3.bf16.msra.mxu0 %v2798_v13 }
 0x218   :  { %2479 = vmatprep.subr.bf16.mxu0 %v2801_v16 }
 0x21b   :  { %2480 = vmatpush3.bf16.msra.mxu0 %v2802_v17 }
 0x21c   :  { %2481 = vmatprep.subr.bf16.mxu0 %v2805_v20  ;;  %v2809_v20 = vld [vmem:[#allocation10 + $0x110] sm:$0xff]  }
 0x21f   :  { %2482 = vmatpush3.bf16.msra.mxu0 %v2806_v21 }
 0x2b5   :  { %v2389_v23 = vpop.f32.mrb[4].mxu0  ;;  %v2417_v24 = vpop.f32.mrb[4].mxu1 }
 0x2b6   :  { %v2390_v26 = vpop.f32.mrb[5].mxu0  ;;  %v2418_v27 = vpop.f32.mrb[5].mxu1 }
 0x2b7   :  { %v2391_v28 = vadd.f32 %v2390_v26, %v2389_v23  ;;  %v2419_v29 = vadd.f32 %v2418_v27, %v2417_v24  ;;  %v2392_v30 = vpop.f32.mrb[6].mxu0  ;;  %v2420_v32 = vpop.f32.mrb[6].mxu1  ;;  %v2810_v26 = vld [vmem:[#allocation10 + $0x118] sm:$0xff]  }
 0x2b8   :  { %v2393_v33 = vpop.f32.mrb[7].mxu0  ;;  %v2421_v34 = vpop.f32.mrb[7].mxu1  ;;  %v2813_v30 = vld [vmem:[#allocation10 + $0x130] sm:$0xff]   ;;  %v2814_v32 = vld [vmem:[#allocation10 + $0x138] sm:$0xff]  }
 0x2b9   :  { %v818_v35 = vadd.f32 %v2391_v28, %v2223_v25  ;;  %v2811_v28 = vld [vmem:[#allocation10 + $0x120] sm:$0xff]  }
 0x2bb   :  { %v867_v36 = vadd.f32 %v2419_v29, %v818_v35  ;;  %v2812_v29 = vld [vmem:[#allocation10 + $0x128] sm:$0xff]  }
 0x2bd   :  { %v2395_v37 = vpop.f32.mrb[8].mxu0  ;;  %v2423_v38 = vpop.f32.mrb[8].mxu1 }
 0x2be   :  { %v2396_v39 = vpop.f32.mrb[9].mxu0  ;;  %v2424_v40 = vpop.f32.mrb[9].mxu1 }
 0x2bf   :  { %v2397_v41 = vadd.f32 %v2396_v39, %v2395_v37  ;;  %v2425_v42 = vadd.f32 %v2424_v40, %v2423_v38  ;;  %v2426_v43 = vpop.f32.mrb[10].mxu1  ;;  %v2398_v44 = vpop.f32.mrb[10].mxu0  ;;  %v2816_v37 = vld [vmem:[#allocation13] sm:$0xff]   ;;  %v2819_v40 = vld [vmem:[#allocation13 + $0x48] sm:$0xff]  }
 0x2c0   :  { %v2427_v45 = vpop.f32.mrb[11].mxu1  ;;  %v2399_v46 = vpop.f32.mrb[11].mxu0  ;;  %v2817_v38 = vld [vmem:[#allocation13 + $0xc0] sm:$0xff]   ;;  %v2822_v43 = vld [vmem:[#allocation13 + $0x88] sm:$0xff]   ;;  %v2823_v44 = vld [vmem:[#allocation13 + $0x50] sm:$0xff]  }
 0x2c1   :  { %v826_v47 = vadd.f32 %v2397_v41, %v2223_v25  ;;  %v2818_v39 = vld [vmem:[#allocation13 + $0x80] sm:$0xff]   ;;  %v2821_v41 = vld [vmem:[#allocation13 + $0xc8] sm:$0xff]   ;;  %v2825_v45 = vld [vmem:[#allocation13 + $0xd0] sm:$0xff]  }
 0x2c2   :  { %v2824_v46 = vld [vmem:[#allocation13 + $0x10] sm:$0xff]  }
 0x2c3   :  { %v875_v48 = vadd.f32 %v2425_v42, %v826_v47  ;;  %v2820_v42 = vld [vmem:[#allocation13 + $0x8] sm:$0xff]   ;;  %v2826_v47 = vld [vmem:[#allocation13 + $0x90] sm:$0xff]  }
 0x2d5   :  { %v2639_v49 = vpop.f32.mrb[12].mxu0 }
 0x2d6   :  { %v924_v50 = vadd.f32 %v2639_v49, %v875_v48  ;;  %v915_v51 = vpop.f32.mrb[13].mxu0  ;;  %v2827_v48 = vld [vmem:[#allocation13 + $0x58] sm:$0xff]  }
 0x2d7   :  { %v916_v52 = vadd.f32 %v915_v51, %v867_v36  ;;  %v2640_v53 = vpop.f32.mrb[14].mxu0  ;;  %v2815_v36 = vld [vmem:[#allocation13 + $0x40] sm:$0xff]   ;;  %v2829_v49 = vld [vmem:[#allocation13 + $0xd8] sm:$0xff]  }
 0x2d8   :  { %v3329_v54 = vmax.f32 %v924_v50, 0.0  ;;  %v918_v55 = vpop.f32.mrb[15].mxu0  ;;  %2505 = vmatprep.subr.bf16.mxu0 %v2815_v36  ;;  %v2828_v50 = vld [vmem:[#allocation13 + $0x18] sm:$0xff]   ;;  %v2833_v53 = vld [vmem:[#allocation13 + $0xe0] sm:$0xff]  }
 0x2d9   :  { %v930_v56 = vmax.f32 %v916_v52, 0.0  ;;  %v2830_v51 = vld [vmem:[#allocation13 + $0x98] sm:$0xff]   ;;  %v2831_v52 = vld [vmem:[#allocation13 + $0x60] sm:$0xff]  }
 0x2da   :  { %v983_v57 = vrot.slane %v3329_v54, 7  ;;  %v992_v58 = vrot.slane %v3329_v54, 1  ;;  %v976_v17 = vrot.slane %v3329_v54, 6  ;;  %v999_v33 = vrot.slane %v3329_v54, 2  ;;  %v2834_v55 = vld [vmem:[#allocation13 + $0xa0] sm:$0xff]  }
 0x2db   :  { %v943_v59 = vrot.slane %v930_v56, 6  ;;  %v950_v60 = vrot.slane %v930_v56, 7  ;;  %v959_v61 = vrot.slane %v930_v56, 1  ;;  %v957_v14 = vpack.c.bf16 %v3059_v1, %v930_v56 }
 0x2dc   :  { %v986_v3 = vsel %vm390_vm8, %v983_v57, %v3265_v63  ;;  %v987_v4 = vsel %vm390_vm8, %v3265_v63, %v983_v57  ;;  %v996_v12 = vsel %vm400_vm9, %v992_v58, %v3268_v0  ;;  %v966_v19 = vrot.slane %v930_v56, 2  ;;  %v2835_v56 = vld [vmem:[#allocation13 + $0x68] sm:$0xff]  }
 0x2dd   :  { %v953_v5 = vsel %vm390_vm8, %v950_v60, %v3265_v63  ;;  %v954_v6 = vsel %vm390_vm8, %v3265_v63, %v950_v60  ;;  %v963_v7 = vsel %vm400_vm9, %v959_v61, %v3268_v0  ;;  %v946_v8 = vsel %vm382_vm7, %v943_v59, %v3271_v2  ;;  %v2836_v57 = vld [vmem:[#allocation13 + $0x28] sm:$0xff]   ;;  %v2839_v60 = vld [vmem:[#allocation13 + $0x70] sm:$0xff]  }
 0x2de   :  { %v955_v9 = vpack.c.bf16 %v953_v5, %v954_v6  ;;  %v964_v10 = vpack.c.bf16 %v3268_v0, %v963_v7  ;;  %v947_v11 = vsel %vm382_vm7, %v3271_v2, %v943_v59  ;;  %v988_v16 = vpack.c.bf16 %v986_v3, %v987_v4  ;;  %v2837_v58 = vld [vmem:[#allocation13 + $0xe8] sm:$0xff]   ;;  %v2840_v61 = vld [vmem:[#allocation13 + $0x30] sm:$0xff]   ;;  %v2843_v5 = vld [vmem:[#allocation13 + $0x78] sm:$0xff]  }
 0x2df   :  { %v948_v13 = vpack.c.bf16 %v946_v8, %v947_v11  ;;  %v997_v18 = vpack.c.bf16 %v3268_v0, %v996_v12  ;;  %v979_v21 = vsel %vm382_vm7, %v976_v17, %v3271_v2  ;;  %v980_v23 = vsel %vm382_vm7, %v3271_v2, %v976_v17  ;;  %v2838_v59 = vld [vmem:[#allocation13 + $0xa8] sm:$0xff]   ;;  %v2841_v3 = vld [vmem:[#allocation13 + $0xf0] sm:$0xff]   ;;  %v2845_v6 = vld [vmem:[#allocation13 + $0xf8] sm:$0xff]  }
 0x2e0   :  { %1375 = vmatprep.mubr.bf16.mxu1 %v955_v9  ;;  %1424 = vmatprep.mubr.bf16.mxu0 %v964_v10  ;;  %v970_v24 = vsel %vm408_vm10, %v966_v19, %v3305_v31  ;;  %v981_v25 = vpack.c.bf16 %v979_v21, %v980_v23  ;;  %v1003_v34 = vsel %vm408_vm10, %v999_v33, %v3305_v31  ;;  %v2842_v4 = vld [vmem:[#allocation13 + $0xb0] sm:$0xff]   ;;  %v2844_v7 = vld [vmem:[#allocation13 + $0x38] sm:$0xff]   ;;  %v2847_v9 = vld [vmem:[#allocation13 + $0x100] sm:$0xff]  }
 0x2e1   :  { %1376 = vmatmul.mubr.bf16.vlgmr.msra.gmra.mrb[12].mxu1 %v948_v13  ;;  %1425 = vmatmul.mubr.bf16.vlgmr.msra.gmra.mrb[16].mxu0 %v957_v14  ;;  %v971_v27 = vpack.c.bf16 %v3305_v31, %v970_v24  ;;  %v1004_v35 = vpack.c.bf16 %v3305_v31, %v1003_v34  ;;  %v2846_v8 = vld [vmem:[#allocation13 + $0xb8] sm:$0xff]  }
 0x2e2   :  { %2642 = vmatpush3.bf16.msra.mxu1 %v2807_v22  ;;  %1383 = vmatprep.mubr.bf16.mxu1 %v988_v16  ;;  %v990_v22 = vpack.c.bf16 %v3059_v1, %v3329_v54  ;;  %v2832_v54 = vld [vmem:[#allocation13 + $0x20] sm:$0xff]   ;;  %v2264_v12 = vld [vmem:[#allocation12] ss:$0 sm:$0xff] }
 0x2e3   :  { %1432 = vmatprep.mubr.bf16.mxu0 %v997_v18  ;;  %2643 = vmatprep.subr.bf16.mxu1 %v2808_v15 }
 0x2e4   :  { %2506 = vmatpush3.bf16.msra.mxu0 %v2816_v37 }
 0x2e5   :  { %2507 = vmatprep.subr.bf16.mxu0 %v2819_v40 }
 0x2e6   :  { %2644 = vmatpush3.bf16.msra.mxu1 %v2808_v15 }
 0x2e7   :  { %2645 = vmatprep.subr.bf16.mxu1 %v2809_v20 }
 0x2e8   :  { %2508 = vmatpush3.bf16.msra.mxu0 %v2820_v42 }
 0x2e9   :  { %1384 = vmatmul.mubr.bf16.gmra.mrb[16].mxu1 %v981_v25  ;;  %1433 = vmatmul.mubr.bf16.gmra.mrb[20].mxu0 %v990_v22 }
 0x2ea   :  { %2646 = vmatpush3.bf16.msra.mxu1 %v2809_v20  ;;  %2657 = vmatprep.mubr.bf16.mxu1 %v971_v27 }
 0x2eb   :  { %2647 = vmatprep.subr.bf16.mxu1 %v2810_v26  ;;  %2509 = vmatprep.subr.bf16.mxu0 %v2823_v44 }
 0x2ec   :  { %2510 = vmatpush3.bf16.msra.mxu0 %v2824_v46 }
 0x2ed   :  { %2511 = vmatprep.subr.bf16.mxu0 %v2827_v48 }
 0x2ee   :  { %2648 = vmatpush3.bf16.msra.mxu1 %v2810_v26 }
 0x2ef   :  { %2649 = vmatprep.subr.bf16.mxu1 %v2811_v28 }
 0x2f0   :  { %2512 = vmatpush3.bf16.msra.mxu0 %v2828_v50 }
 0x2f1   :  { %2513 = vmatprep.subr.bf16.mxu0 %v2831_v52 }
 0x2f2   :  { %2650 = vmatpush3.bf16.msra.mxu1 %v2811_v28 }
 0x2f3   :  { %2651 = vmatprep.subr.bf16.mxu1 %v2812_v29 }
 0x2f4   :  { %2514 = vmatpush3.bf16.msra.mxu0 %v2832_v54 }
 0x2f5   :  { %2515 = vmatprep.subr.bf16.mxu0 %v2835_v56 }
 0x2f6   :  { %2652 = vmatpush3.bf16.msra.mxu1 %v2812_v29 }
 0x2f7   :  { %2653 = vmatprep.subr.bf16.mxu1 %v2813_v30 }
 0x2f8   :  { %2516 = vmatpush3.bf16.msra.mxu0 %v2836_v57 }
 0x2f9   :  { %2517 = vmatprep.subr.bf16.mxu0 %v2839_v60  ;;  %v2848_v60 = vld [vmem:[#allocation13 + $0x108] sm:$0xff]  }
 0x2fa   :  { %2654 = vmatpush3.bf16.msra.mxu1 %v2813_v30 }
 0x2fb   :  { %2655 = vmatprep.subr.bf16.mxu1 %v2814_v32 }
 0x2fc   :  { %2518 = vmatpush3.bf16.msra.mxu0 %v2840_v61 }
 0x2fd   :  { %2519 = vmatprep.subr.bf16.mxu0 %v2843_v5 }
 0x2fe   :  { %2656 = vmatpush3.bf16.msra.mxu1 %v2814_v32 }
 0x2ff   :  { %2533 = vmatprep.subr.bf16.mxu1 %v2817_v38 }
 0x300   :  { %2520 = vmatpush3.bf16.msra.mxu0 %v2844_v7 }
 0x301   :  { %2658 = vmatmul.mubr.bf16.vlgmr.msra.gmra.mrb[20].mxu1 %v1004_v35  ;;  %2661 = vmatprep.subr.bf16.mxu0 %v2847_v9 }
 0x302   :  { %2534 = vmatpush3.bf16.msra.mxu1 %v2818_v39 }
 0x303   :  { %2535 = vmatprep.subr.bf16.mxu1 %v2821_v41 }
 0x306   :  { %2536 = vmatpush3.bf16.msra.mxu1 %v2822_v43 }
 0x307   :  { %2537 = vmatprep.subr.bf16.mxu1 %v2825_v45 }
 0x30a   :  { %2538 = vmatpush3.bf16.msra.mxu1 %v2826_v47 }
 0x30b   :  { %2539 = vmatprep.subr.bf16.mxu1 %v2829_v49 }
 0x30e   :  { %2540 = vmatpush3.bf16.msra.mxu1 %v2830_v51 }
 0x30f   :  { %2541 = vmatprep.subr.bf16.mxu1 %v2833_v53 }
 0x312   :  { %2542 = vmatpush3.bf16.msra.mxu1 %v2834_v55 }
 0x313   :  { %2543 = vmatprep.subr.bf16.mxu1 %v2837_v58 }
 0x316   :  { %2544 = vmatpush3.bf16.msra.mxu1 %v2838_v59 }
 0x317   :  { %2545 = vmatprep.subr.bf16.mxu1 %v2841_v3 }
 0x31a   :  { %2546 = vmatpush3.bf16.msra.mxu1 %v2842_v4 }
 0x31b   :  { %2547 = vmatprep.subr.bf16.mxu1 %v2845_v6  ;;  %v2849_v6 = vld [vmem:[#allocation13 + $0x110] sm:$0xff]  }
 0x31e   :  { %2548 = vmatpush3.bf16.msra.mxu1 %v2846_v8 }
 0x3b4   :  { %v2455_v10 = vpop.f32.mrb[12].mxu1  ;;  %v2483_v11 = vpop.f32.mrb[16].mxu0 }
 0x3b5   :  { %v2456_v13 = vpop.f32.mrb[13].mxu1  ;;  %v2484_v14 = vpop.f32.mrb[17].mxu0 }
 0x3b6   :  { %v2457_v15 = vadd.f32 %v2456_v13, %v2455_v10  ;;  %v2485_v16 = vadd.f32 %v2484_v14, %v2483_v11  ;;  %v2458_v17 = vpop.f32.mrb[14].mxu1  ;;  %v2486_v18 = vpop.f32.mrb[18].mxu0  ;;  %v2850_v11 = vld [vmem:[#allocation13 + $0x118] sm:$0xff]   ;;  %v2851_v13 = vld [vmem:[#allocation13 + $0x120] sm:$0xff]   ;;  %v2853_v14 = vld [vmem:[#allocation13 + $0x130] sm:$0xff]  }
 0x3b7   :  { %v2459_v19 = vpop.f32.mrb[15].mxu1  ;;  %v2487_v20 = vpop.f32.mrb[19].mxu0  ;;  %v2855_v18 = vld [vmem:[%s3474_s8] sm:$0xff]  }
 0x3b8   :  { %v1378_v21 = vadd.f32 %v2457_v15, %v2264_v12  ;;  %v2854_v15 = vld [vmem:[#allocation13 + $0x138] sm:$0xff]   ;;  %2681 = vmatprep.subr.bf16.mxu1 %v2855_v18  ;;  %v2856_v19 = vld [vmem:[%s3474_s8 + $0x8] sm:$0xff]  }
 0x3b9   :  { %v2859_v20 = vld [vmem:[%s3474_s8 + $0x20] sm:$0xff]  }
 0x3ba   :  { %v1427_v23 = vadd.f32 %v2485_v16, %v1378_v21  ;;  %v2860_v21 = vld [vmem:[%s3474_s8 + $0x28] sm:$0xff]  }
 0x3bc   :  { %v2461_v24 = vpop.f32.mrb[16].mxu1  ;;  %v2489_v25 = vpop.f32.mrb[20].mxu0 }
 0x3bd   :  { %v2462_v22 = vpop.f32.mrb[17].mxu1  ;;  %v2490_v26 = vpop.f32.mrb[21].mxu0 }
 0x3be   :  { %v2463_v27 = vadd.f32 %v2462_v22, %v2461_v24  ;;  %v2491_v28 = vadd.f32 %v2490_v26, %v2489_v25  ;;  %v2464_v29 = vpop.f32.mrb[18].mxu1  ;;  %v2492_v30 = vpop.f32.mrb[22].mxu0  ;;  %v2862_v24 = vld [vmem:[%s3474_s8 + $0x38] sm:$0xff]   ;;  %v2305_v26 = vld [vmem:[#allocation15] ss:$0 sm:$0xff] }
 0x3bf   :  { %v2465_v32 = vpop.f32.mrb[19].mxu1  ;;  %v2493_v33 = vpop.f32.mrb[23].mxu0 }
 0x3c0   :  { %v1386_v34 = vadd.f32 %v2463_v27, %v2264_v12 }
 0x3c2   :  { %v1435_v35 = vadd.f32 %v2491_v28, %v1386_v34 }
 0x3d4   :  { %v2659_v36 = vpop.f32.mrb[20].mxu1 }
 0x3d5   :  { %v1484_v37 = vadd.f32 %v2659_v36, %v1435_v35  ;;  %v1475_v38 = vpop.f32.mrb[21].mxu1 }
 0x3d6   :  { %v1476_v39 = vadd.f32 %v1475_v38, %v1427_v23  ;;  %v2660_v40 = vpop.f32.mrb[22].mxu1  ;;  %v2861_v23 = vld [vmem:[%s3474_s8 + $0x30] sm:$0xff]  }
 0x3d7   :  { %v3378_v41 = vmax.f32 %v1484_v37, 0.0  ;;  %v1478_v42 = vpop.f32.mrb[23].mxu1 }
 0x3d8   :  { %v1490_v43 = vmax.f32 %v1476_v39, 0.0 }
 0x3d9   :  { %v1543_v44 = vrot.slane %v3378_v41, 7  ;;  %v1552_v45 = vrot.slane %v3378_v41, 1  ;;  %v1536_v3 = vrot.slane %v3378_v41, 6 }
 0x3da   :  { %v1503_v46 = vrot.slane %v1490_v43, 6  ;;  %v1510_v47 = vrot.slane %v1490_v43, 7  ;;  %v1519_v48 = vrot.slane %v1490_v43, 1  ;;  %v1517_v59 = vpack.c.bf16 %v3059_v1, %v1490_v43 }
 0x3db   :  { %v1546_v49 = vsel %vm390_vm8, %v1543_v44, %v3265_v63  ;;  %v1547_v50 = vsel %vm390_vm8, %v3265_v63, %v1543_v44  ;;  %v1556_v58 = vsel %vm400_vm9, %v1552_v45, %v3268_v0  ;;  %v1526_v5 = vrot.slane %v1490_v43, 2 }
 0x3dc   :  { %v1513_v51 = vsel %vm390_vm8, %v1510_v47, %v3265_v63  ;;  %v1514_v52 = vsel %vm390_vm8, %v3265_v63, %v1510_v47  ;;  %v1523_v53 = vsel %vm400_vm9, %v1519_v48, %v3268_v0  ;;  %v1506_v54 = vsel %vm382_vm7, %v1503_v46, %v3271_v2 }
 0x3dd   :  { %v1515_v55 = vpack.c.bf16 %v1513_v51, %v1514_v52  ;;  %v1524_v56 = vpack.c.bf16 %v3268_v0, %v1523_v53  ;;  %v1507_v57 = vsel %vm382_vm7, %v3271_v2, %v1503_v46  ;;  %v1548_v61 = vpack.c.bf16 %v1546_v49, %v1547_v50 }
 0x3de   :  { %v1508_v63 = vpack.c.bf16 %v1506_v54, %v1507_v57  ;;  %v1557_v4 = vpack.c.bf16 %v3268_v0, %v1556_v58  ;;  %v1539_v7 = vsel %vm382_vm7, %v1536_v3, %v3271_v2  ;;  %v1540_v8 = vsel %vm382_vm7, %v3271_v2, %v1536_v3  ;;  %v2852_v2 = vld [vmem:[#allocation13 + $0x128] sm:$0xff]  }
 0x3df   :  { %1935 = vmatprep.mubr.bf16.mxu0 %v1515_v55  ;;  %1984 = vmatprep.mubr.bf16.mxu1 %v1524_v56  ;;  %v1530_v10 = vsel %vm408_vm10, %v1526_v5, %v3305_v31  ;;  %v1541_v0 = vpack.c.bf16 %v1539_v7, %v1540_v8 }
 0x3e0   :  { %1936 = vmatmul.mubr.bf16.vlgmr.msra.gmra.mrb[24].mxu0 %v1508_v63  ;;  %1985 = vmatmul.mubr.bf16.vlgmr.msra.gmra.mrb[24].mxu1 %v1517_v59  ;;  %v1531_v12 = vpack.c.bf16 %v3305_v31, %v1530_v10 }
 0x3e1   :  { %2662 = vmatpush3.bf16.msra.mxu0 %v2847_v9  ;;  %1943 = vmatprep.mubr.bf16.mxu0 %v1548_v61  ;;  %v1550_v9 = vpack.c.bf16 %v3059_v1, %v3378_v41  ;;  %v1559_v1 = vrot.slane %v3378_v41, 2 }
 0x3e2   :  { %1992 = vmatprep.mubr.bf16.mxu1 %v1557_v4  ;;  %2663 = vmatprep.subr.bf16.mxu0 %v2848_v60 }
 0x3e3   :  { %v1563_v16 = vsel %vm408_vm10, %v1559_v1, %v3305_v31  ;;  %2682 = vmatpush3.bf16.msra.mxu1 %v2855_v18 }
 0x3e4   :  { %v1564_v17 = vpack.c.bf16 %v3305_v31, %v1563_v16  ;;  %2683 = vmatprep.subr.bf16.mxu1 %v2856_v19  ;;  %v2858_v31 = vld [vmem:[%s3474_s8 + $0x18] sm:$0xff]  }
 0x3e5   :  { %2664 = vmatpush3.bf16.msra.mxu0 %v2848_v60 }
 0x3e6   :  { %2665 = vmatprep.subr.bf16.mxu0 %v2849_v6 }
 0x3e7   :  { %2684 = vmatpush3.bf16.msra.mxu1 %v2856_v19 }
 0x3e8   :  { %1944 = vmatmul.mubr.bf16.gmra.mrb[28].mxu0 %v1541_v0  ;;  %1993 = vmatmul.mubr.bf16.gmra.mrb[28].mxu1 %v1550_v9 }
 0x3e9   :  { %2666 = vmatpush3.bf16.msra.mxu0 %v2849_v6  ;;  %2677 = vmatprep.mubr.bf16.mxu0 %v1531_v12 }
 0x3ea   :  { %2667 = vmatprep.subr.bf16.mxu0 %v2850_v11  ;;  %2685 = vmatprep.subr.bf16.mxu1 %v2857_v62 }
 0x3eb   :  { %2686 = vmatpush3.bf16.msra.mxu1 %v2857_v62 }
 0x3ec   :  { %2687 = vmatprep.subr.bf16.mxu1 %v2858_v31 }
 0x3ed   :  { %2668 = vmatpush3.bf16.msra.mxu0 %v2850_v11  ;;  %v2346_v11 = vld [vmem:[%s3475_s9] ss:$0 sm:$0xff] }
 0x3ee   :  { %2669 = vmatprep.subr.bf16.mxu0 %v2851_v13 }
 0x3ef   :  { %2688 = vmatpush3.bf16.msra.mxu1 %v2858_v31 }
 0x3f0   :  { %2689 = vmatprep.subr.bf16.mxu1 %v2859_v20 }
 0x3f1   :  { %2670 = vmatpush3.bf16.msra.mxu0 %v2851_v13 }
 0x3f2   :  { %2671 = vmatprep.subr.bf16.mxu0 %v2852_v2 }
 0x3f3   :  { %2690 = vmatpush3.bf16.msra.mxu1 %v2859_v20 }
 0x3f4   :  { %2691 = vmatprep.subr.bf16.mxu1 %v2860_v21 }
 0x3f5   :  { %2672 = vmatpush3.bf16.msra.mxu0 %v2852_v2 }
 0x3f6   :  { %2673 = vmatprep.subr.bf16.mxu0 %v2853_v14 }
 0x3f7   :  { %2692 = vmatpush3.bf16.msra.mxu1 %v2860_v21 }
 0x3f8   :  { %2693 = vmatprep.subr.bf16.mxu1 %v2861_v23 }
 0x3f9   :  { %2674 = vmatpush3.bf16.msra.mxu0 %v2853_v14 }
 0x3fa   :  { %2675 = vmatprep.subr.bf16.mxu0 %v2854_v15 }
 0x3fb   :  { %2694 = vmatpush3.bf16.msra.mxu1 %v2861_v23 }
 0x3fc   :  { %2695 = vmatprep.subr.bf16.mxu1 %v2862_v24 }
 0x3fd   :  { %2676 = vmatpush3.bf16.msra.mxu0 %v2854_v15 }
 0x3ff   :  { %2696 = vmatpush3.bf16.msra.mxu1 %v2862_v24 }
 0x400   :  { %2678 = vmatmul.mubr.bf16.vlgmr.msra.gmra.mrb[32].mxu0 %v1564_v17 }
 0x4b3   :  { %v2521_v25 = vpop.f32.mrb[24].mxu0  ;;  %v2549_v22 = vpop.f32.mrb[24].mxu1 }
 0x4b4   :  { %v2522_v27 = vpop.f32.mrb[25].mxu0  ;;  %v2550_v28 = vpop.f32.mrb[25].mxu1 }
 0x4b5   :  { %v2523_v29 = vadd.f32 %v2522_v27, %v2521_v25  ;;  %v2551_v30 = vadd.f32 %v2550_v28, %v2549_v22  ;;  %v2524_v32 = vpop.f32.mrb[26].mxu0  ;;  %v2552_v33 = vpop.f32.mrb[26].mxu1 }
 0x4b6   :  { %v2525_v34 = vpop.f32.mrb[27].mxu0  ;;  %v2553_v35 = vpop.f32.mrb[27].mxu1 }
 0x4b7   :  { %v1938_v36 = vadd.f32 %v2523_v29, %v2305_v26  ;;  %v2526_v37 = vadd.f32 %v2525_v34, %v2524_v32  ;;  %v2554_v38 = vadd.f32 %v2553_v35, %v2552_v33 }
 0x4b9   :  { %v1941_v39 = vadd.f32 %v2526_v37, %v2305_v26  ;;  %v1987_v40 = vadd.f32 %v2551_v30, %v1938_v36 }
 0x4bb   :  { %v2527_v41 = vpop.f32.mrb[28].mxu0  ;;  %v2555_v42 = vpop.f32.mrb[28].mxu1  ;;  %v1990_v43 = vadd.f32 %v2554_v38, %v1941_v39 }
 0x4bc   :  { %v2528_v44 = vpop.f32.mrb[29].mxu0  ;;  %v2556_v45 = vpop.f32.mrb[29].mxu1 }
 0x4bd   :  { %v2529_v46 = vadd.f32 %v2528_v44, %v2527_v41  ;;  %v2557_v47 = vadd.f32 %v2556_v45, %v2555_v42  ;;  %v2530_v48 = vpop.f32.mrb[30].mxu0  ;;  %v2558_v49 = vpop.f32.mrb[30].mxu1 }
 0x4be   :  { %v2531_v50 = vpop.f32.mrb[31].mxu0  ;;  %v2559_v51 = vpop.f32.mrb[31].mxu1 }
 0x4bf   :  { %v1946_v52 = vadd.f32 %v2529_v46, %v2305_v26  ;;  %v2532_v53 = vadd.f32 %v2531_v50, %v2530_v48  ;;  %v2560_v54 = vadd.f32 %v2559_v51, %v2558_v49 }
 0x4c1   :  { %v1949_v55 = vadd.f32 %v2532_v53, %v2305_v26  ;;  %v1995_v56 = vadd.f32 %v2557_v47, %v1946_v52 }
 0x4c3   :  { %v1998_v57 = vadd.f32 %v2560_v54, %v1949_v55 }
 0x4d3   :  { %v2679_v58 = vpop.f32.mrb[32].mxu0 }
 0x4d4   :  { %v2044_v63 = vadd.f32 %v2679_v58, %v1995_v56  ;;  %v2035_v59 = vpop.f32.mrb[33].mxu0 }
 0x4d5   :  { %v2036_v60 = vadd.f32 %v2035_v59, %v1987_v40  ;;  %v2680_v61 = vpop.f32.mrb[34].mxu0 }
 0x4d6   :  { %v2047_v3 = vadd.f32 %v2680_v61, %v1998_v57  ;;  %v2038_v4 = vpop.f32.mrb[35].mxu0  ;;  %v2052_v6 = vmax.f32 %v2044_v63, 0.0 }
 0x4d7   :  { %v2039_v5 = vadd.f32 %v2038_v4, %v1990_v43  ;;  %v2050_v8 = vmax.f32 %v2036_v60, 0.0 }
 0x4d8   :  { %v2053_v7 = vmax.f32 %v2047_v3, 0.0 }
 0x4d9   :  { %v2051_v10 = vmax.f32 %v2039_v5, 0.0 }
 0x4da   :  { %v2055_v0 = vpack.c.bf16 %v2053_v7, %v2052_v6 }
 0x4db   :  { %v2054_v9 = vpack.c.bf16 %v2051_v10, %v2050_v8 }
 0x4dd   :  { %2697 = vmatprep.mubr.bf16.mxu1 %v2054_v9 }
 0x4de   :  { %2698 = vmatmul.mubr.bf16.vlgmr.msra.gmra.mrb[32].mxu1 %v2055_v0 }
 0x5b1   :  { %v2699_v12 = vpop.f32.mrb[32].mxu1 }
 0x5b2   :  { %v2170_v13 = vadd.f32 %v2699_v12, %v2346_v11  ;;  %v2161_v2 = vpop.f32.mrb[33].mxu1 }
 0x5b3   :  { %v2162_v14 = vadd.f32 %v2346_v11, %v2161_v2  ;;  %v2700_v15 = vpop.f32.mrb[34].mxu1 }
 0x5b4   :  { %2179 = vst [vmem:[#allocation16 + $0x10] sm:$0xff] %v2170_v13  ;;  %v2173_v1 = vadd.f32 %v2700_v15, %v2346_v11  ;;  %v2164_v16 = vpop.f32.mrb[35].mxu1 }
 0x5b5   :  { %2176 = vst [vmem:[#allocation16] sm:$0xff] %v2162_v14  ;;  %v2165_v17 = vadd.f32 %v2346_v11, %v2164_v16 }
 0x5b6   :  { %2180 = vst [vmem:[#allocation16 + $0x18] sm:$0xff] %v2173_v1 }
 0x5b7   :  { %2177 = vst [vmem:[#allocation16 + $0x8] sm:$0xff] %v2165_v17 }
 0x5b8   :  { %3028 = shalt.err (!%p3025_p4)
}
 0x5b9   :  { %s3029_s22 = scalar_lea.hbm %s3476_s10, 512 }
 0x5ba   :  { %p3030_p5 = scmp.ne.s32.totalorder %s3476_s10, %s3029_s22  ;;  %p3033_p6 = scmp.lt.u32.totalorder %s3029_s22, %s3476_s10 }
 0x5bc   :  { %p3035_p7 = pnand %p3033_p6, %p3030_p5 }
 0x5be   :  { %3038 = shalt.err (!%p3035_p7)
}
 0x5bf   :  { %s3063_s2 = smov 128   ;;  %s3064_s14 = smov 8  }
 0x5c0   :  { %2192 = dma.vmem_to_hbm [thread:$0]  %s2187_s28, 512, %s3476_s10, [#allocation6], %s3063_s2, %s3063_s2, %s3064_s14  }
 0x5c1   :  { %3047 = dma.done.wait [#allocation6], 512  }
 0x5c2   :  { %3048 = vsyncadd [#allocation6], 4294966784 }
 0x5c3   :  { %2196 = vsyncpa [#allocation5], 1 }
 0x5c4   :  { %2197 = vsyncpa [#allocation8], 1 }
 0x5c5   :  { %2198 = vsyncpa [#allocation11], 1 }
 0x5c6   :  { %2199 = vsyncpa [#allocation14], 1 }
 0x5c7   :  { %2200 = vsyncpa [#allocation6], 1 }

</bundles_post_ra>
